<compile_context>
chip_gen: v6e
topology: v6e:2x2x1
jax: 0.10.0
libtpu: 0.0.40
codegen_flags: <defaults>
</compile_context>

<pallas_src>
import functools

import jax
import jax.numpy as jnp
import numpy as np
from jax.experimental import pallas as pl
from jax.experimental.pallas import tpu as pltpu


def graphsage_kernel(idx_ref, x_ref, xc_ref, w1_ref, b1_ref, w2x_ref, w2h_ref,
                     b2_ref, out_ref, *, n_vertices, k_neighbors):
    # idx_ref: (1, K, Nt) int32  neighbor ids (global, in [0, N)) for this node tile
    # x_ref  : (1, C, N)  bf16   full vertex table for this batch (gather source)
    # xc_ref : (1, C, Nt) bf16   center features for this node tile (lane-aligned)
    # w1_ref : (C, C)     bf16   nn1 weight (out, in)
    # b1_ref : (C, 1)     f32
    # w2x_ref: (Cout, C)  bf16   nn2 weight, center half
    # w2h_ref: (Cout, C)  bf16   nn2 weight, aggregated-neighbor half
    # b2_ref : (Cout, 1)  f32
    # out_ref: (1, Cout, Nt) f32
    x_all = x_ref[0]                                   # (C, N) bf16
    idx = idx_ref[0]                                   # (K, Nt) int32
    nt = idx.shape[-1]

    # row m of the select matrix corresponds to global vertex id m.
    row_ids = jax.lax.broadcasted_iota(jnp.int32, (n_vertices, nt), 0)

    # K-slab gather + nn1 pre-activation, elementwise max across slabs (VPU).
    m = None
    for k in range(k_neighbors):                       # K is small & static: unroll
        sel = (row_ids == idx[k:k + 1, :]).astype(jnp.bfloat16)      # (N, Nt) one-hot
        # MXU gather: exact select of bf16 columns (one 1.0 per column, rest 0).
        xj_k = jnp.dot(x_all, sel, preferred_element_type=jnp.float32)   # (C, Nt)
        s_k = jnp.dot(w1_ref[...], xj_k.astype(jnp.bfloat16),
                      preferred_element_type=jnp.float32)                # (C, Nt)
        m = s_k if m is None else jnp.maximum(m, s_k)

    # bias + ReLU after the max (monotone -> identical to max(relu(. + b1))).
    h = jnp.maximum(m + b1_ref[...], 0.0)                                # (C, Nt) f32

    # nn2 with the concat split into two accumulated dots (no channel concat).
    o = jnp.dot(w2x_ref[...], xc_ref[0], preferred_element_type=jnp.float32)
    o = o + jnp.dot(w2h_ref[...], h.astype(jnp.bfloat16),
                    preferred_element_type=jnp.float32)                  # (Cout, Nt)
    out_ref[0] = jnp.maximum(o + b2_ref[...], 0.0)


def graphsage3d_forward(x_ncdhw, edge_index, w1, b1, w2, b2, *, node_tile=128):
    """x_ncdhw: (B, C, N, 1, 1) f32;  edge_index: (2, B, N, K) int32.

    Weights follow squeezed PyTorch Conv3d(k=1) layout:
      w1: (C, C) = (out, in), b1: (C,), w2: (Cout, 2C), b2: (Cout,).
    """
    B, C, N = x_ncdhw.shape[:3]
    K = edge_index.shape[-1]
    Cout = w2.shape[0]
    Nt = node_tile if (N % node_tile == 0) else N
    n_tiles = N // Nt

    # ---- wrapper glue: channels-first needs NO transpose of the NCDHW input ----
    x = x_ncdhw.reshape(B, C, N).astype(jnp.bfloat16)                # (B, C, N)
    idx = edge_index[0].transpose(0, 2, 1).astype(jnp.int32)         # (B, K, N)
    w1_bf = w1.astype(jnp.bfloat16)                                  # (C, C)
    w2x = w2[:, :C].astype(jnp.bfloat16)                             # (Cout, C) center
    w2h = w2[:, C:].astype(jnp.bfloat16)                             # (Cout, C) neighbor
    b1c = b1.reshape(C, 1).astype(jnp.float32)
    b2c = b2.reshape(Cout, 1).astype(jnp.float32)

    kern = functools.partial(graphsage_kernel, n_vertices=N, k_neighbors=K)
    out = pl.pallas_call(
        kern,
        out_shape=jax.ShapeDtypeStruct((B, Cout, N), jnp.float32),
        grid=(B, n_tiles),
        in_specs=[
            pl.BlockSpec((1, K, Nt), lambda b, t: (b, 0, t)),   # neighbor ids
            pl.BlockSpec((1, C, N), lambda b, t: (b, 0, 0)),    # full vertex table
            pl.BlockSpec((1, C, Nt), lambda b, t: (b, 0, t)),   # center tile
            pl.BlockSpec((C, C), lambda b, t: (0, 0)),
            pl.BlockSpec((C, 1), lambda b, t: (0, 0)),
            pl.BlockSpec((Cout, C), lambda b, t: (0, 0)),
            pl.BlockSpec((Cout, C), lambda b, t: (0, 0)),
            pl.BlockSpec((Cout, 1), lambda b, t: (0, 0)),
        ],
        out_specs=pl.BlockSpec((1, Cout, Nt), lambda b, t: (b, 0, t)),
        compiler_params=pltpu.CompilerParams(
            dimension_semantics=("parallel", "parallel"),
            vmem_limit_bytes=64 * 1024 * 1024),
    )(idx, x, x, w1_bf, b1c, w2x, w2h, b2c)

    # back to PyTorch NCDHW layout (pure reshape, no transpose).
    return out.reshape(B, Cout, N, 1, 1)


def graphsage3d_reference(x_ncdhw, edge_index, w1, b1, w2, b2,
                          *, matmul_dtype=jnp.float32):
    """Pure-JAX reference. matmul_dtype=bfloat16 mirrors the kernel's numerics
    (bf16 matmul inputs, f32 accumulation); float32 is the PyTorch-style math."""
    B, C, N = x_ncdhw.shape[:3]
    K = edge_index.shape[-1]
    Cout = w2.shape[0]
    x = x_ncdhw.reshape(B, C, N).transpose(0, 2, 1)                  # (B, N, C) f32
    idx = edge_index[0].reshape(B, N * K)
    xj = jnp.take_along_axis(x, idx[..., None], axis=1)              # (B, N*K, C)
    w1t = w1.T.astype(matmul_dtype)                                  # (Cin, Cout)
    w2t = w2.T.astype(matmul_dtype)                                  # (2C, Cout)
    h = jnp.dot(xj.astype(matmul_dtype), w1t,
                preferred_element_type=jnp.float32) + b1
    h = jnp.maximum(h, 0.0)
    h = h.reshape(B, N, K, C).max(axis=2)                            # (B, N, C)
    z = jnp.concatenate([x, h], axis=-1).astype(matmul_dtype)        # (B, N, 2C)
    o = jnp.dot(z, w2t, preferred_element_type=jnp.float32) + b2
    o = jnp.maximum(o, 0.0)
    return o.transpose(0, 2, 1).reshape(B, Cout, N, 1, 1)


if __name__ == "__main__":
    B, C, Cout, N, K = 2, 16, 32, 256, 8

    key = jax.random.PRNGKey(0)
    k1, k2, k3, k4, kx, ki = jax.random.split(key, 6)

    # Conv3d(k=1) weights, squeezed to (out, in); biases 1-D.
    w1 = jax.random.normal(k1, (C, C), jnp.float32) * 0.1
    b1 = jax.random.normal(k2, (C,), jnp.float32) * 0.1
    w2 = jax.random.normal(k3, (Cout, 2 * C), jnp.float32) * 0.1
    b2 = jax.random.normal(k4, (Cout,), jnp.float32) * 0.1

    x = jax.random.normal(kx, (B, C, N, 1, 1), jnp.float32)
    edge_index = jax.random.randint(ki, (2, B, N, K), 0, N, jnp.int32)

    out = graphsage3d_forward(x, edge_index, w1, b1, w2, b2)
    out = jax.block_until_ready(out)

    # Tight check against a reference that mirrors the kernel's bf16-input /
    # f32-accumulate numerics policy.
    ref_bf16 = graphsage3d_reference(x, edge_index, w1, b1, w2, b2,
                                     matmul_dtype=jnp.bfloat16)
    np.testing.assert_allclose(np.asarray(out), np.asarray(ref_bf16),
                               rtol=1e-4, atol=1e-4)

    # Loose check against pure-f32 PyTorch-style math (deviation bounded by the
    # bf16 rounding of the matmul inputs).
    ref_f32 = graphsage3d_reference(x, edge_index, w1, b1, w2, b2,
                                    matmul_dtype=jnp.float32)
    np.testing.assert_allclose(np.asarray(out), np.asarray(ref_f32),
                               rtol=5e-2, atol=5e-2)
    print("KERNEL_OK")
</pallas_src>

<mosaic_0001>
module attributes {stable_mosaic.version = 11 : i64} {
  func.func @graphsage_kernel(%arg0: i32, %arg1: i32, %arg2: memref<1x8x128xi32, #tpu.memory_space<vmem>>, %arg3: memref<1x16x256xbf16, #tpu.memory_space<vmem>>, %arg4: memref<1x16x128xbf16, #tpu.memory_space<vmem>>, %arg5: memref<16x16xbf16, #tpu.memory_space<vmem>>, %arg6: memref<16x1xf32, #tpu.memory_space<vmem>>, %arg7: memref<32x16xbf16, #tpu.memory_space<vmem>>, %arg8: memref<32x16xbf16, #tpu.memory_space<vmem>>, %arg9: memref<32x1xf32, #tpu.memory_space<vmem>>, %arg10: memref<1x32x128xf32, #tpu.memory_space<vmem>>) attributes {dimension_semantics = [#tpu.dimension_semantics<parallel>, #tpu.dimension_semantics<parallel>], iteration_bounds = array<i64: 2, 2>, scalar_prefetch = 0 : i64, scratch_operands = 0 : i64, tpu.core_type = #tpu.core_type<tc>, window_params = [{transform_indices = @transform_0, window_bounds = array<i64: 1, 8, 128>}, {transform_indices = @transform_1, window_bounds = array<i64: 1, 16, 256>}, {transform_indices = @transform_2, window_bounds = array<i64: 1, 16, 128>}, {pipeline_mode = #tpu.pipeline_mode<synchronous>, transform_indices = @transform_3, window_bounds = array<i64: 16, 16>}, {pipeline_mode = #tpu.pipeline_mode<synchronous>, transform_indices = @transform_4, window_bounds = array<i64: 16, 1>}, {pipeline_mode = #tpu.pipeline_mode<synchronous>, transform_indices = @transform_5, window_bounds = array<i64: 32, 16>}, {pipeline_mode = #tpu.pipeline_mode<synchronous>, transform_indices = @transform_6, window_bounds = array<i64: 32, 16>}, {pipeline_mode = #tpu.pipeline_mode<synchronous>, transform_indices = @transform_7, window_bounds = array<i64: 32, 1>}, {transform_indices = @transform_8, window_bounds = array<i64: 1, 32, 128>}]} {
    %c0 = arith.constant 0 : index
    %c0_0 = arith.constant 0 : index
    %c0_1 = arith.constant 0 : index
    %0 = vector.load %arg3[%c0, %c0_0, %c0_1] : memref<1x16x256xbf16, #tpu.memory_space<vmem>>, vector<1x16x256xbf16>
    %1 = vector.shape_cast %0 : vector<1x16x256xbf16> to vector<16x256xbf16>
    %c0_2 = arith.constant 0 : index
    %c0_3 = arith.constant 0 : index
    %c0_4 = arith.constant 0 : index
    %2 = vector.load %arg2[%c0_2, %c0_3, %c0_4] : memref<1x8x128xi32, #tpu.memory_space<vmem>>, vector<1x8x128xi32>
    %3 = vector.shape_cast %2 : vector<1x8x128xi32> to vector<8x128xi32>
    %4 = tpu.iota {dimensions = array<i32: 0>} : vector<256x128xi32>
    %5 = vector.extract_strided_slice %3 {offsets = [0, 0], sizes = [1, 128], strides = [1, 1]} : vector<8x128xi32> to vector<1x128xi32>
    %6 = vector.broadcast %5 : vector<1x128xi32> to vector<256x128xi32>
    %7 = arith.cmpi eq, %4, %6 : vector<256x128xi32>
    %8 = arith.extui %7 : vector<256x128xi1> to vector<256x128xi32>
    %9 = arith.sitofp %8 : vector<256x128xi32> to vector<256x128xf32>
    %10 = arith.truncf %9 : vector<256x128xf32> to vector<256x128xbf16>
    %cst = arith.constant dense<0.000000e+00> : vector<16x128xf32>
    %11 = tpu.matmul %1, %10, %cst {dimension_numbers = #tpu.dot_dimension_numbers<[1], [0], [0], [1], [0, 0, 1, 1], [], []>} : vector<16x256xbf16>, vector<256x128xbf16>, vector<16x128xf32> -> vector<16x128xf32>
    %c0_5 = arith.constant 0 : index
    %c0_6 = arith.constant 0 : index
    %12 = vector.load %arg5[%c0_5, %c0_6] : memref<16x16xbf16, #tpu.memory_space<vmem>>, vector<16x16xbf16>
    %13 = arith.truncf %11 : vector<16x128xf32> to vector<16x128xbf16>
    %cst_7 = arith.constant dense<0.000000e+00> : vector<16x128xf32>
    %14 = tpu.matmul %12, %13, %cst_7 {dimension_numbers = #tpu.dot_dimension_numbers<[1], [0], [0], [1], [0, 0, 1, 1], [], []>} : vector<16x16xbf16>, vector<16x128xbf16>, vector<16x128xf32> -> vector<16x128xf32>
    %15 = vector.extract_strided_slice %3 {offsets = [1, 0], sizes = [1, 128], strides = [1, 1]} : vector<8x128xi32> to vector<1x128xi32>
    %16 = vector.broadcast %15 : vector<1x128xi32> to vector<256x128xi32>
    %17 = arith.cmpi eq, %4, %16 : vector<256x128xi32>
    %18 = arith.extui %17 : vector<256x128xi1> to vector<256x128xi32>
    %19 = arith.sitofp %18 : vector<256x128xi32> to vector<256x128xf32>
    %20 = arith.truncf %19 : vector<256x128xf32> to vector<256x128xbf16>
    %cst_8 = arith.constant dense<0.000000e+00> : vector<16x128xf32>
    %21 = tpu.matmul %1, %20, %cst_8 {dimension_numbers = #tpu.dot_dimension_numbers<[1], [0], [0], [1], [0, 0, 1, 1], [], []>} : vector<16x256xbf16>, vector<256x128xbf16>, vector<16x128xf32> -> vector<16x128xf32>
    %c0_9 = arith.constant 0 : index
    %c0_10 = arith.constant 0 : index
    %22 = vector.load %arg5[%c0_9, %c0_10] : memref<16x16xbf16, #tpu.memory_space<vmem>>, vector<16x16xbf16>
    %23 = arith.truncf %21 : vector<16x128xf32> to vector<16x128xbf16>
    %cst_11 = arith.constant dense<0.000000e+00> : vector<16x128xf32>
    %24 = tpu.matmul %22, %23, %cst_11 {dimension_numbers = #tpu.dot_dimension_numbers<[1], [0], [0], [1], [0, 0, 1, 1], [], []>} : vector<16x16xbf16>, vector<16x128xbf16>, vector<16x128xf32> -> vector<16x128xf32>
    %25 = arith.maximumf %14, %24 : vector<16x128xf32>
    %26 = vector.extract_strided_slice %3 {offsets = [2, 0], sizes = [1, 128], strides = [1, 1]} : vector<8x128xi32> to vector<1x128xi32>
    %27 = vector.broadcast %26 : vector<1x128xi32> to vector<256x128xi32>
    %28 = arith.cmpi eq, %4, %27 : vector<256x128xi32>
    %29 = arith.extui %28 : vector<256x128xi1> to vector<256x128xi32>
    %30 = arith.sitofp %29 : vector<256x128xi32> to vector<256x128xf32>
    %31 = arith.truncf %30 : vector<256x128xf32> to vector<256x128xbf16>
    %cst_12 = arith.constant dense<0.000000e+00> : vector<16x128xf32>
    %32 = tpu.matmul %1, %31, %cst_12 {dimension_numbers = #tpu.dot_dimension_numbers<[1], [0], [0], [1], [0, 0, 1, 1], [], []>} : vector<16x256xbf16>, vector<256x128xbf16>, vector<16x128xf32> -> vector<16x128xf32>
    %c0_13 = arith.constant 0 : index
    %c0_14 = arith.constant 0 : index
    %33 = vector.load %arg5[%c0_13, %c0_14] : memref<16x16xbf16, #tpu.memory_space<vmem>>, vector<16x16xbf16>
    %34 = arith.truncf %32 : vector<16x128xf32> to vector<16x128xbf16>
    %cst_15 = arith.constant dense<0.000000e+00> : vector<16x128xf32>
    %35 = tpu.matmul %33, %34, %cst_15 {dimension_numbers = #tpu.dot_dimension_numbers<[1], [0], [0], [1], [0, 0, 1, 1], [], []>} : vector<16x16xbf16>, vector<16x128xbf16>, vector<16x128xf32> -> vector<16x128xf32>
    %36 = arith.maximumf %25, %35 : vector<16x128xf32>
    %37 = vector.extract_strided_slice %3 {offsets = [3, 0], sizes = [1, 128], strides = [1, 1]} : vector<8x128xi32> to vector<1x128xi32>
    %38 = vector.broadcast %37 : vector<1x128xi32> to vector<256x128xi32>
    %39 = arith.cmpi eq, %4, %38 : vector<256x128xi32>
    %40 = arith.extui %39 : vector<256x128xi1> to vector<256x128xi32>
    %41 = arith.sitofp %40 : vector<256x128xi32> to vector<256x128xf32>
    %42 = arith.truncf %41 : vector<256x128xf32> to vector<256x128xbf16>
    %cst_16 = arith.constant dense<0.000000e+00> : vector<16x128xf32>
    %43 = tpu.matmul %1, %42, %cst_16 {dimension_numbers = #tpu.dot_dimension_numbers<[1], [0], [0], [1], [0, 0, 1, 1], [], []>} : vector<16x256xbf16>, vector<256x128xbf16>, vector<16x128xf32> -> vector<16x128xf32>
    %c0_17 = arith.constant 0 : index
    %c0_18 = arith.constant 0 : index
    %44 = vector.load %arg5[%c0_17, %c0_18] : memref<16x16xbf16, #tpu.memory_space<vmem>>, vector<16x16xbf16>
    %45 = arith.truncf %43 : vector<16x128xf32> to vector<16x128xbf16>
    %cst_19 = arith.constant dense<0.000000e+00> : vector<16x128xf32>
    %46 = tpu.matmul %44, %45, %cst_19 {dimension_numbers = #tpu.dot_dimension_numbers<[1], [0], [0], [1], [0, 0, 1, 1], [], []>} : vector<16x16xbf16>, vector<16x128xbf16>, vector<16x128xf32> -> vector<16x128xf32>
    %47 = arith.maximumf %36, %46 : vector<16x128xf32>
    %48 = vector.extract_strided_slice %3 {offsets = [4, 0], sizes = [1, 128], strides = [1, 1]} : vector<8x128xi32> to vector<1x128xi32>
    %49 = vector.broadcast %48 : vector<1x128xi32> to vector<256x128xi32>
    %50 = arith.cmpi eq, %4, %49 : vector<256x128xi32>
    %51 = arith.extui %50 : vector<256x128xi1> to vector<256x128xi32>
    %52 = arith.sitofp %51 : vector<256x128xi32> to vector<256x128xf32>
    %53 = arith.truncf %52 : vector<256x128xf32> to vector<256x128xbf16>
    %cst_20 = arith.constant dense<0.000000e+00> : vector<16x128xf32>
    %54 = tpu.matmul %1, %53, %cst_20 {dimension_numbers = #tpu.dot_dimension_numbers<[1], [0], [0], [1], [0, 0, 1, 1], [], []>} : vector<16x256xbf16>, vector<256x128xbf16>, vector<16x128xf32> -> vector<16x128xf32>
    %c0_21 = arith.constant 0 : index
    %c0_22 = arith.constant 0 : index
    %55 = vector.load %arg5[%c0_21, %c0_22] : memref<16x16xbf16, #tpu.memory_space<vmem>>, vector<16x16xbf16>
    %56 = arith.truncf %54 : vector<16x128xf32> to vector<16x128xbf16>
    %cst_23 = arith.constant dense<0.000000e+00> : vector<16x128xf32>
    %57 = tpu.matmul %55, %56, %cst_23 {dimension_numbers = #tpu.dot_dimension_numbers<[1], [0], [0], [1], [0, 0, 1, 1], [], []>} : vector<16x16xbf16>, vector<16x128xbf16>, vector<16x128xf32> -> vector<16x128xf32>
    %58 = arith.maximumf %47, %57 : vector<16x128xf32>
    %59 = vector.extract_strided_slice %3 {offsets = [5, 0], sizes = [1, 128], strides = [1, 1]} : vector<8x128xi32> to vector<1x128xi32>
    %60 = vector.broadcast %59 : vector<1x128xi32> to vector<256x128xi32>
    %61 = arith.cmpi eq, %4, %60 : vector<256x128xi32>
    %62 = arith.extui %61 : vector<256x128xi1> to vector<256x128xi32>
    %63 = arith.sitofp %62 : vector<256x128xi32> to vector<256x128xf32>
    %64 = arith.truncf %63 : vector<256x128xf32> to vector<256x128xbf16>
    %cst_24 = arith.constant dense<0.000000e+00> : vector<16x128xf32>
    %65 = tpu.matmul %1, %64, %cst_24 {dimension_numbers = #tpu.dot_dimension_numbers<[1], [0], [0], [1], [0, 0, 1, 1], [], []>} : vector<16x256xbf16>, vector<256x128xbf16>, vector<16x128xf32> -> vector<16x128xf32>
    %c0_25 = arith.constant 0 : index
    %c0_26 = arith.constant 0 : index
    %66 = vector.load %arg5[%c0_25, %c0_26] : memref<16x16xbf16, #tpu.memory_space<vmem>>, vector<16x16xbf16>
    %67 = arith.truncf %65 : vector<16x128xf32> to vector<16x128xbf16>
    %cst_27 = arith.constant dense<0.000000e+00> : vector<16x128xf32>
    %68 = tpu.matmul %66, %67, %cst_27 {dimension_numbers = #tpu.dot_dimension_numbers<[1], [0], [0], [1], [0, 0, 1, 1], [], []>} : vector<16x16xbf16>, vector<16x128xbf16>, vector<16x128xf32> -> vector<16x128xf32>
    %69 = arith.maximumf %58, %68 : vector<16x128xf32>
    %70 = vector.extract_strided_slice %3 {offsets = [6, 0], sizes = [1, 128], strides = [1, 1]} : vector<8x128xi32> to vector<1x128xi32>
    %71 = vector.broadcast %70 : vector<1x128xi32> to vector<256x128xi32>
    %72 = arith.cmpi eq, %4, %71 : vector<256x128xi32>
    %73 = arith.extui %72 : vector<256x128xi1> to vector<256x128xi32>
    %74 = arith.sitofp %73 : vector<256x128xi32> to vector<256x128xf32>
    %75 = arith.truncf %74 : vector<256x128xf32> to vector<256x128xbf16>
    %cst_28 = arith.constant dense<0.000000e+00> : vector<16x128xf32>
    %76 = tpu.matmul %1, %75, %cst_28 {dimension_numbers = #tpu.dot_dimension_numbers<[1], [0], [0], [1], [0, 0, 1, 1], [], []>} : vector<16x256xbf16>, vector<256x128xbf16>, vector<16x128xf32> -> vector<16x128xf32>
    %c0_29 = arith.constant 0 : index
    %c0_30 = arith.constant 0 : index
    %77 = vector.load %arg5[%c0_29, %c0_30] : memref<16x16xbf16, #tpu.memory_space<vmem>>, vector<16x16xbf16>
    %78 = arith.truncf %76 : vector<16x128xf32> to vector<16x128xbf16>
    %cst_31 = arith.constant dense<0.000000e+00> : vector<16x128xf32>
    %79 = tpu.matmul %77, %78, %cst_31 {dimension_numbers = #tpu.dot_dimension_numbers<[1], [0], [0], [1], [0, 0, 1, 1], [], []>} : vector<16x16xbf16>, vector<16x128xbf16>, vector<16x128xf32> -> vector<16x128xf32>
    %80 = arith.maximumf %69, %79 : vector<16x128xf32>
    %81 = vector.extract_strided_slice %3 {offsets = [7, 0], sizes = [1, 128], strides = [1, 1]} : vector<8x128xi32> to vector<1x128xi32>
    %82 = vector.broadcast %81 : vector<1x128xi32> to vector<256x128xi32>
    %83 = arith.cmpi eq, %4, %82 : vector<256x128xi32>
    %84 = arith.extui %83 : vector<256x128xi1> to vector<256x128xi32>
    %85 = arith.sitofp %84 : vector<256x128xi32> to vector<256x128xf32>
    %86 = arith.truncf %85 : vector<256x128xf32> to vector<256x128xbf16>
    %cst_32 = arith.constant dense<0.000000e+00> : vector<16x128xf32>
    %87 = tpu.matmul %1, %86, %cst_32 {dimension_numbers = #tpu.dot_dimension_numbers<[1], [0], [0], [1], [0, 0, 1, 1], [], []>} : vector<16x256xbf16>, vector<256x128xbf16>, vector<16x128xf32> -> vector<16x128xf32>
    %c0_33 = arith.constant 0 : index
    %c0_34 = arith.constant 0 : index
    %88 = vector.load %arg5[%c0_33, %c0_34] : memref<16x16xbf16, #tpu.memory_space<vmem>>, vector<16x16xbf16>
    %89 = arith.truncf %87 : vector<16x128xf32> to vector<16x128xbf16>
    %cst_35 = arith.constant dense<0.000000e+00> : vector<16x128xf32>
    %90 = tpu.matmul %88, %89, %cst_35 {dimension_numbers = #tpu.dot_dimension_numbers<[1], [0], [0], [1], [0, 0, 1, 1], [], []>} : vector<16x16xbf16>, vector<16x128xbf16>, vector<16x128xf32> -> vector<16x128xf32>
    %91 = arith.maximumf %80, %90 : vector<16x128xf32>
    %c0_36 = arith.constant 0 : index
    %c0_37 = arith.constant 0 : index
    %92 = vector.load %arg6[%c0_36, %c0_37] : memref<16x1xf32, #tpu.memory_space<vmem>>, vector<16x1xf32>
    %93 = vector.broadcast %92 : vector<16x1xf32> to vector<16x128xf32>
    %94 = arith.addf %91, %93 : vector<16x128xf32>
    %cst_38 = arith.constant 0.000000e+00 : f32
    %95 = vector.broadcast %cst_38 : f32 to vector<16x128xf32>
    %96 = arith.maximumf %94, %95 : vector<16x128xf32>
    %c0_39 = arith.constant 0 : index
    %c0_40 = arith.constant 0 : index
    %97 = vector.load %arg7[%c0_39, %c0_40] : memref<32x16xbf16, #tpu.memory_space<vmem>>, vector<32x16xbf16>
    %c0_41 = arith.constant 0 : index
    %c0_42 = arith.constant 0 : index
    %c0_43 = arith.constant 0 : index
    %98 = vector.load %arg4[%c0_41, %c0_42, %c0_43] : memref<1x16x128xbf16, #tpu.memory_space<vmem>>, vector<1x16x128xbf16>
    %99 = vector.shape_cast %98 : vector<1x16x128xbf16> to vector<16x128xbf16>
    %cst_44 = arith.constant dense<0.000000e+00> : vector<32x128xf32>
    %100 = tpu.matmul %97, %99, %cst_44 {dimension_numbers = #tpu.dot_dimension_numbers<[1], [0], [0], [1], [0, 0, 1, 1], [], []>} : vector<32x16xbf16>, vector<16x128xbf16>, vector<32x128xf32> -> vector<32x128xf32>
    %c0_45 = arith.constant 0 : index
    %c0_46 = arith.constant 0 : index
    %101 = vector.load %arg8[%c0_45, %c0_46] : memref<32x16xbf16, #tpu.memory_space<vmem>>, vector<32x16xbf16>
    %102 = arith.truncf %96 : vector<16x128xf32> to vector<16x128xbf16>
    %cst_47 = arith.constant dense<0.000000e+00> : vector<32x128xf32>
    %103 = tpu.matmul %101, %102, %cst_47 {dimension_numbers = #tpu.dot_dimension_numbers<[1], [0], [0], [1], [0, 0, 1, 1], [], []>} : vector<32x16xbf16>, vector<16x128xbf16>, vector<32x128xf32> -> vector<32x128xf32>
    %104 = arith.addf %100, %103 : vector<32x128xf32>
    %c0_48 = arith.constant 0 : index
    %c0_49 = arith.constant 0 : index
    %105 = vector.load %arg9[%c0_48, %c0_49] : memref<32x1xf32, #tpu.memory_space<vmem>>, vector<32x1xf32>
    %106 = vector.broadcast %105 : vector<32x1xf32> to vector<32x128xf32>
    %107 = arith.addf %104, %106 : vector<32x128xf32>
    %cst_50 = arith.constant 0.000000e+00 : f32
    %108 = vector.broadcast %cst_50 : f32 to vector<32x128xf32>
    %109 = arith.maximumf %107, %108 : vector<32x128xf32>
    %c0_51 = arith.constant 0 : index
    %c0_52 = arith.constant 0 : index
    %c0_53 = arith.constant 0 : index
    %110 = vector.load %arg10[%c0_51, %c0_52, %c0_53] : memref<1x32x128xf32, #tpu.memory_space<vmem>>, vector<1x32x128xf32>
    %111 = vector.shape_cast %110 : vector<1x32x128xf32> to vector<32x128xf32>
    %112 = vector.shape_cast %109 : vector<32x128xf32> to vector<1x32x128xf32>
    tpu.vector_store %arg10[%c0_51, %c0_52, %c0_53], %112 {strides = array<i32>} : memref<1x32x128xf32, #tpu.memory_space<vmem>>, vector<1x32x128xf32>,
    return
  }
  func.func @transform_0(%arg0: i32, %arg1: i32) -> (i32, i32, i32) {
    %c0_i32 = arith.constant 0 : i32
    %c0_i32_0 = arith.constant 0 : i32
    return %arg0, %c0_i32, %arg1 : i32, i32, i32
  }
  func.func @transform_1(%arg0: i32, %arg1: i32) -> (i32, i32, i32) {
    %c0_i32 = arith.constant 0 : i32
    %c0_i32_0 = arith.constant 0 : i32
    %c0_i32_1 = arith.constant 0 : i32
    return %arg0, %c0_i32, %c0_i32_0 : i32, i32, i32
  }
  func.func @transform_2(%arg0: i32, %arg1: i32) -> (i32, i32, i32) {
    %c0_i32 = arith.constant 0 : i32
    %c0_i32_0 = arith.constant 0 : i32
    return %arg0, %c0_i32, %arg1 : i32, i32, i32
  }
  func.func @transform_3(%arg0: i32, %arg1: i32) -> (i32, i32) {
    %c0_i32 = arith.constant 0 : i32
    %c0_i32_0 = arith.constant 0 : i32
    %c0_i32_1 = arith.constant 0 : i32
    return %c0_i32, %c0_i32_0 : i32, i32
  }
  func.func @transform_4(%arg0: i32, %arg1: i32) -> (i32, i32) {
    %c0_i32 = arith.constant 0 : i32
    %c0_i32_0 = arith.constant 0 : i32
    %c0_i32_1 = arith.constant 0 : i32
    return %c0_i32, %c0_i32_0 : i32, i32
  }
  func.func @transform_5(%arg0: i32, %arg1: i32) -> (i32, i32) {
    %c0_i32 = arith.constant 0 : i32
    %c0_i32_0 = arith.constant 0 : i32
    %c0_i32_1 = arith.constant 0 : i32
    return %c0_i32, %c0_i32_0 : i32, i32
  }
  func.func @transform_6(%arg0: i32, %arg1: i32) -> (i32, i32) {
    %c0_i32 = arith.constant 0 : i32
    %c0_i32_0 = arith.constant 0 : i32
    %c0_i32_1 = arith.constant 0 : i32
    return %c0_i32, %c0_i32_0 : i32, i32
  }
  func.func @transform_7(%arg0: i32, %arg1: i32) -> (i32, i32) {
    %c0_i32 = arith.constant 0 : i32
    %c0_i32_0 = arith.constant 0 : i32
    %c0_i32_1 = arith.constant 0 : i32
    return %c0_i32, %c0_i32_0 : i32, i32
  }
  func.func @transform_8(%arg0: i32, %arg1: i32) -> (i32, i32, i32) {
    %c0_i32 = arith.constant 0 : i32
    %c0_i32_0 = arith.constant 0 : i32
    return %arg0, %c0_i32, %arg1 : i32, i32, i32
  }
}

</mosaic_0001>

<bundles_post_ra>
// kernel: tpu_custom_call.1
= control target key start
LH: loop header
LB: loop body
LE: loop exit
PB: predicated region body
PF: predicated region fallthrough
CT: control target
= control target key end

     0   :  { %s4642_s0 = inlined_call_operand.vmem [shape: s32[2,8,256], index: 0, kind: input, shape index: {}]   ;;  %s4643_s1 = inlined_call_operand.vmem [shape: bf16[2,16,256], index: 1, kind: input, shape index: {}]   ;;  %s4644_s2 = inlined_call_operand.vmem [shape: bf16[2,16,256], index: 2, kind: input, shape index: {}]   ;;  %s4645_s3 = inlined_call_operand.hbm [shape: bf16[16,16], index: 3, kind: input, shape index: {}]   ;;  %s4646_s4 = inlined_call_operand.vmem [shape: f32[16,1], index: 4, kind: input, shape index: {}]   ;;  %s4647_s5 = inlined_call_operand.vmem [shape: bf16[32,16], index: 5, kind: input, shape index: {}]   ;;  %s4648_s6 = inlined_call_operand.vmem [shape: bf16[32,16], index: 6, kind: input, shape index: {}]   ;;  %s4649_s7 = inlined_call_operand.vmem [shape: f32[32,1], index: 7, kind: input, shape index: {}]   ;;  %s4650_s8 = inlined_call_operand.hbm [shape: f32[2,32,256], index: 8, kind: output, shape index: {}]  }
   0x1   :  { %4659 = sst [smem:[#allocation15_spill]] %s4650_s8 }
   0x2   :  { %13 = vsyncpa [#allocation4], 0 }
   0x3   :  { %14 = vsyncpa [#allocation5], 0 }
   0x4   :  { %16 = vsyncpa [#allocation5 + $0x1], 0  ;;  %s3536_s27 = smov 0   ;;  %s3538_s28 = smov 0  }
   0x5   :  { %s3540_s29 = smov 0   ;;  %s3542_s30 = smov 0  }
   0x6   :  { %s3544_s9 = smov 0   ;;  %s3546_s10 = smov 0  }
   0x7   :  { %s3548_s11 = smov 0   ;;  %s3550_s12 = smov 0  }
   0x8 LB: > { %4660 = sst [smem:[#allocation9_spill]] %s3450_s27  ;;  %s2438_s13 = sadd.s32 4294967295, %s3478_s12   ;;  %s3478_s12 = sphi %s3550_s12, %s22_s12   ;;  %s3474_s11 = sphi %s3548_s11, %s4686_s11   ;;  %s3470_s10 = sphi %s3546_s10, %s4685_s10   ;;  %s3466_s9 = sphi %s3544_s9, %s4684_s9   ;;  %s3462_s30 = sphi %s3542_s30, %s4683_s30   ;;  %s3458_s29 = sphi %s3540_s29, %s4682_s29   ;;  %s3454_s28 = sphi %s3538_s28, %s4681_s28   ;;  %s3450_s27 = sphi %s3536_s27, %s4680_s27  }
   0x9   : > { %s2439_s14 = sadd.s32 4294967294, %s3478_s12   ;;  %s31_s15 = sadd.s32 1, %s3470_s10 }
   0xa   : > { %s34_s16 = sadd.s32 1, %s3474_s11  ;;  %p32_p0 = scmp.ge.s32.totalorder %s31_s15, 2 }
   0xb   : > { %s97_s17 = sadd.s32 1, %s3458_s29  ;;  %p104_p1 = scmp.ne.s32.totalorder %s3458_s29, %s3454_s28 }
   0xc   : > { %p105_p2 = scmp.eq.s32.totalorder %s3478_s12, 0  ;;  %s4688_s15 = smov (%p32_p0, %s31_s15), 0 }
   0xd   : > { %4661 = sst [smem:[#allocation10_spill]] %s4688_s15  ;;  %s4690_s16 = smov (!%p32_p0, %s34_s16), %s3474_s11 }
   0xe   : > { %s93_s18 = ssub.s32 %s3470_s10, %s4688_s15  ;;  %p3589_p3 = por %p105_p2, %p104_p1 }
   0xf   : > { %p36_p4 = scmp.ge.s32.totalorder %s4690_s16, 2  ;;  %p241_p5 = scmp.eq.s32.totalorder %s2438_s13, 3 }
  0x10   : > { %p246_p6 = scmp.ne.s32.totalorder %s3454_s28, %s3450_s27  ;;  %p247_p7 = scmp.eq.s32.totalorder %s2439_s14, 3 }
  0x11   : > { %s4692_s16 = smov (%p36_p4, %s4690_s16), 0  ;;  %p3597_p8 = por %p241_p5, %p104_p1 }
  0x12   : > { %4663 = sst [smem:[#allocation11_spill]] %s4692_s16  ;;  %p3601_p9 = por %p247_p7, %p246_p6 }
  0x13   : > { %s4664_s20 = scalar_select %p3597_p8, 1, 0 }
  0x14   : > { %s4666_s21 = scalar_select %p3601_p9, 1, 0 }
  0x15   : > { %4665 = sst [smem:[#allocation12_spill]] %s4664_s20  ;;  %s92_s22 = ssub.s32 %s3474_s11, %s4692_s16 }
  0x16   : > { %4667 = sst [smem:[#allocation13_spill]] %s4666_s21  ;;  %p2440_p10 = scmp.ge.s32.totalorder %s3478_s12, 1 }
  0x17   : > { %s94_s23 = sor.u32 %s93_s18, %s92_s22  ;;  %p254_p11 = scmp.lt.s32.totalorder %s3478_s12, 5 }
  0x18   : > { %p95_p12 = scmp.eq.s32.totalorder %s94_s23, 0  ;;  %p3613_p0 = scmp.eq.s32.totalorder %s2438_s13, 0 }
  0x19   : > { %p3609_p13 = pnand %p2440_p10, %p254_p11  ;;  %s3480_s14 = smov [#allocation3]  }
  0x1a   : > { %s3618_s26 = scalar_select %p95_p12, %s3458_s29, %s97_s17  }
  0x1b   : > { %p3256_p1 = pneg %p3609_p13  ;;  %s266_s16 = sshll.u32 %s3480_s14, 4  ;;  %s267_s16 = int_to_ptr.vmem [resolvable:$true] %s266_s16 }
  0x1c   : > { %4670 = sst [smem:[#allocation14_spill]] %s3618_s26  ;;  %s3367_s18 = scalar_lea.vmem %s267_s16, 128 }
  0x1d   : > { %p3257_p2 = pnand %p3613_p0, %p3256_p1  ;;  %p3368_p5 = scmp.ne.s32.totalorder %s267_s16, %s3367_s18 }
  0x1e   : > { %p3375_p10 = scmp.lt.s32.totalorder %s267_s16, %s267_s16  ;;  %p3376_p11 = scmp.lt.s32.totalorder %s3367_s18, %s3367_s18 }
  0x1f   : > { %p3358_p4 = pneg %p3257_p2 }
  0x20   : > { %p3377_p9 = por %p3376_p11, %p3375_p10 }
  0x21   : > { %p3370_p6 = pnand %p3368_p5, %p3358_p4 }
  0x23   : > { %p3371_p7 = pneg %p3370_p6 }
  0x25   : > { %p3378_p8 = pnand %p3377_p9, %p3371_p7 }
  0x27   : > { %3381 = shalt.err (!%p3378_p8)
}
  0x28   : > { %s3481_s13 = smov 64   ;;  %s3482_s17 = smov 4  }
  0x29   : > { %3259 = dma.hbm_to_vmem [thread:$0]  (!%p3257_p2), %s4645_s3, 128, %s267_s16, [#allocation4], %s3481_s13, %s3481_s13, %s3482_s17  }
  0x2a   : > { %p2442_p12 = scmp.ge.s32.totalorder %s3478_s12, 4 }
  0x2c   : > { %288 = sbr.rel (%p2442_p12) target bundleno = 56 (0x38), region = 36 }
  0x31   : > { %310 = sbr.rel (!%p3589_p3) target bundleno = 56 (0x38), region = 48  ;;  %s312_s14 = sand.u32 (%p3589_p3), 1, %s3458_s29  }
  0x32   : > { %s2444_s18 = sshll.u32 (%p3589_p3), %s3474_s11, 2  ;;  %s2443_s15 = sshll.u32 (%p3589_p3), %s312_s14, 3 }
  0x33   : > { %s316_s26 = sadd.s32 (%p3589_p3), %s3470_s10, %s2444_s18  ;;  %s314_s16 = scalar_lea.vmem (%p3589_p3), [#allocation2], %s2443_s15 }
  0x34   : > { %s2445_s21 = sshll.u32 (%p3589_p3), %s316_s26, 2 }
  0x35   : > { %s318_s20 = scalar_lea.vmem (%p3589_p3), %s4644_s2, %s2445_s21 }
  0x36   : > { %v335_v0 = vld [vmem:[%s318_s20] sm:$0xf]  ;;  %v337_v1 = vld [vmem:[%s318_s20 + $0x8] sm:$0xf] }
  0x37   : > { %336 = vst [vmem:[%s314_s16] sm:$0xf] %v335_v0  ;;  %338 = vst [vmem:[%s314_s16 + $0x4] sm:$0xf] %v337_v1 }
  0x38 PF: > { %369 = sbr.rel (%p3609_p13) target bundleno = 2202 (0x89a), region = 89  ;;  %s3639_s19 = sand.u32 (!%p3609_p13), 1, %s3454_s28  }
  0x39   : > { %s2447_s26 = sshll.u32 (!%p3609_p13), %s3639_s19, 3 }
  0x3a   : > { %s3642_s13 = scalar_lea.vmem (!%p3609_p13), [#allocation2], %s2447_s26 }
  0x3d   : > { %3441 = dma.done.wait (%p3613_p0), [#allocation4], 128  }
  0x3e   : > { %3443 = vsyncadd (%p3613_p0), [#allocation4], 4294967168  ;;  %p422_p3 = scmp.lt.s32.totalorder %s3466_s9, 1  ;;  %p424_p8 = scmp.lt.s32.totalorder %s3462_s30, 1  ;;  %v439_v2 = vlaneseq  ;;  %v3483_v20 = vmov 1.0|1.0  }
  0x3f   : > { %v3484_v41 = vmov 0.0   ;;  %v3870_v51 = vld [vmem:[#allocation3] sm:$0xff]   ;;  %s3487_s26 = smov [#allocation6]  }
  0x40   : > { %s423_s8 = scalar_select %p422_p3, %s3466_s9, 1  ;;  %v3651_v3 = vshrl.u32 %v439_v2, 7  ;;  %3190 = vmatprep.subr.bf16.mxu1 %v3484_v41 }
  0x41   : > { %s425_s27 = scalar_select %p424_p8, %s3462_s30, 1 }
  0x42   : > { %s2450_s15 = sshll.u32 %s423_s8, 1  ;;  %s2991_s20 = sshll.u32 %s423_s8, 4  ;;  %v474_v4 = vsub.s32 0, %v3651_v3  ;;  %v3666_v5 = vadd.s32 240, %v3651_v3  ;;  %v3669_v6 = vadd.s32 248, %v3651_v3  ;;  %v3672_v7 = vadd.s32 112, %v3651_v3 }
  0x43   : > { %s427_s21 = sadd.s32 %s2450_s15, %s425_s27  ;;  %s3658_s22 = scalar_lea.vmem %s4643_s1, %s2991_s20  ;;  %v3675_v8 = vadd.s32 120, %v3651_v3  ;;  %v3681_v10 = vadd.s32 224, %v3651_v3  ;;  %v3684_v11 = vadd.s32 232, %v3651_v3  ;;  %v3687_v12 = vadd.s32 96, %v3651_v3 }
  0x44   : > { %s2451_s24 = sshll.u32 %s427_s21, 3  ;;  %v3690_v13 = vadd.s32 104, %v3651_v3  ;;  %v3696_v15 = vadd.s32 208, %v3651_v3  ;;  %v3699_v16 = vadd.s32 216, %v3651_v3  ;;  %v3702_v17 = vld [vmem:[%s3658_s22 + $0x4] ss:$8 sps:$4 sm:$0xff]  }
  0x45   : > { %s3663_s18 = scalar_lea.vmem %s4642_s0, %s2451_s24  ;;  %v3705_v18 = vadd.s32 80, %v3651_v3  ;;  %v3708_v19 = vadd.s32 88, %v3651_v3  ;;  %630 = vmatprep.mubr.bf16.mxu0 %v3702_v17  ;;  %v3733_v21 = vadd.s32 192, %v3651_v3  ;;  %v3736_v22 = vadd.s32 200, %v3651_v3  ;;  %v3848_v40 = vld [vmem:[%s3658_s22] ss:$8 sps:$4 sm:$0xff]  }
  0x46   : > { %v3678_v9 = vld [vmem:[%s3663_s18] sm:$0xff]  ;;  %v3745_v23 = vadd.s32 64, %v3651_v3  ;;  %v3748_v24 = vadd.s32 72, %v3651_v3  ;;  %v3755_v25 = vadd.s32 176, %v3651_v3  ;;  %v3758_v26 = vadd.s32 184, %v3651_v3  ;;  %s2449_s20 = sshll.u32 %s3639_s19, 5 }
  0x47   : > { %v3693_v14 = vrot.slane %v3678_v9, %v474_v4  ;;  %v3767_v27 = vadd.s32 48, %v3651_v3  ;;  %v3770_v28 = vadd.s32 56, %v3651_v3  ;;  %v3777_v29 = vadd.s32 160, %v3651_v3  ;;  %s2987_s21 = sshll.u32 %s3466_s9, 3  ;;  %s421_s17 = scalar_lea.vmem [#allocation6], %s2449_s20 }
  0x48   : > { %v3780_v30 = vadd.s32 168, %v3651_v3  ;;  %v3789_v31 = vadd.s32 32, %v3651_v3  ;;  %v3792_v32 = vadd.s32 40, %v3651_v3  ;;  %v3799_v33 = vadd.s32 144, %v3651_v3  ;;  %s2310_s24 = sadd.s32 %s3462_s30, %s2987_s21  ;;  %s2313_s25 = sshll.u32 %s421_s17, 4  ;;  %s4584_s25 = int_to_ptr.vmem [resolvable:$true] %s2313_s25 }
  0x49   : > { %vm506_vm0 = vcmp.eq.s32.totalorder %v3666_v5, %v3693_v14  ;;  %vm507_vm1 = vcmp.eq.s32.totalorder %v3669_v6, %v3693_v14  ;;  %vm490_vm2 = vcmp.eq.s32.totalorder %v3672_v7, %v3693_v14  ;;  %vm491_vm3 = vcmp.eq.s32.totalorder %v3675_v8, %v3693_v14  ;;  %s2988_s9 = sshll.u32 %s2310_s24, 7  ;;  %s3382_s16 = scalar_lea.vmem %s4584_s25, 512 }
  0x4a   : > { %vm2504_vm4 = vmpackc.low %vm507_vm1, %vm506_vm0  ;;  %vm504_vm5 = vcmp.eq.s32.totalorder %v3681_v10, %v3693_v14  ;;  %vm505_vm6 = vcmp.eq.s32.totalorder %v3684_v11, %v3693_v14  ;;  %vm488_vm7 = vcmp.eq.s32.totalorder %v3687_v12, %v3693_v14  ;;  %vm489_vm8 = vcmp.eq.s32.totalorder %v3690_v13, %v3693_v14  ;;  %p3383_p9 = scmp.ne.s32.totalorder %s4584_s25, %s3382_s16  ;;  %s3386_s8 = sshll.u32 %s3487_s26, 4  ;;  %s3387_s8 = int_to_ptr.vmem [resolvable:$false] %s3386_s8 }
  0x4b   : > { %2992 = vmatprep.subr.msk.bf16.mxu0 %vm2504_vm4, %v3483_v20  ;;  %vm2488_vm9 = vmpackc.low %vm491_vm3, %vm490_vm2  ;;  %vm502_vm10 = vcmp.eq.s32.totalorder %v3696_v15, %v3693_v14  ;;  %vm503_vm11 = vcmp.eq.s32.totalorder %v3699_v16, %v3693_v14  ;;  %vm486_vm15 = vcmp.eq.s32.totalorder %v3705_v18, %v3693_v14  ;;  %vm487_vm0 = vcmp.eq.s32.totalorder %v3708_v19, %v3693_v14  ;;  %s3388_s27 = scalar_lea.vmem %s3387_s8, 1024  ;;  %p3389_p2 = scmp.lt.s32.totalorder %s4584_s25, %s3387_s8 }
  0x4c   : > { %2993 = vmatpush3.bf16.msk.msra.mxu0 %vm2488_vm9, %v3483_v20  ;;  %vm2506_vm12 = vmpackc.low %vm505_vm6, %vm504_vm5  ;;  %vm500_vm1 = vcmp.eq.s32.totalorder %v3733_v21, %v3693_v14  ;;  %vm501_vm2 = vcmp.eq.s32.totalorder %v3736_v22, %v3693_v14  ;;  %vm484_vm5 = vcmp.eq.s32.totalorder %v3745_v23, %v3693_v14  ;;  %vm485_vm6 = vcmp.eq.s32.totalorder %v3748_v24, %v3693_v14  ;;  %p3390_p4 = scmp.lt.s32.totalorder %s3388_s27, %s3382_s16 }
  0x4d   : > { %2994 = vmatprep.subr.msk.bf16.mxu0 %vm2506_vm12, %v3483_v20  ;;  %vm2490_vm13 = vmpackc.low %vm489_vm8, %vm488_vm7  ;;  %vm498_vm7 = vcmp.eq.s32.totalorder %v3755_v25, %v3693_v14  ;;  %vm499_vm8 = vcmp.eq.s32.totalorder %v3758_v26, %v3693_v14  ;;  %vm483_vm12 = vcmp.eq.s32.totalorder %v3770_v28, %v3693_v14  ;;  %v3802_v34 = vadd.s32 152, %v3651_v3 }
  0x4e   : > { %vm2508_vm14 = vmpackc.low %vm503_vm11, %vm502_vm10  ;;  %vm482_vm11 = vcmp.eq.s32.totalorder %v3767_v27, %v3693_v14  ;;  %v3811_v35 = vadd.s32 16, %v3651_v3  ;;  %v3814_v36 = vadd.s32 24, %v3651_v3  ;;  %v3821_v37 = vadd.s32 128, %v3651_v3  ;;  %p3391_p5 = por %p3390_p4, %p3389_p2 }
  0x4f   : > { %vm2492_vm3 = vmpackc.low %vm487_vm0, %vm486_vm15  ;;  %v3824_v38 = vadd.s32 136, %v3651_v3  ;;  %v3833_v39 = vadd.s32 8, %v3651_v3  ;;  %v694_v42 = vsub.s32 1, %v3651_v3  ;;  %v895_v52 = vsub.s32 2, %v3651_v3 }
  0x50   : > { %2995 = vmatpush3.bf16.msk.msra.mxu0 %vm2490_vm13, %v3483_v20  ;;  %vm2510_vm4 = vmpackc.low %vm501_vm2, %vm500_vm1  ;;  %vm496_vm13 = vcmp.eq.s32.totalorder %v3777_v29, %v3693_v14  ;;  %vm480_vm1 = vcmp.eq.s32.totalorder %v3789_v31, %v3693_v14  ;;  %vm481_vm2 = vcmp.eq.s32.totalorder %v3792_v32, %v3693_v14  ;;  %v1096_v1 = vsub.s32 3, %v3651_v3 }
  0x51   : > { %2996 = vmatprep.subr.msk.bf16.mxu0 %vm2508_vm14, %v3483_v20  ;;  %vm2494_vm9 = vmpackc.low %vm485_vm6, %vm484_vm5  ;;  %vm497_vm14 = vcmp.eq.s32.totalorder %v3780_v30, %v3693_v14  ;;  %v3860_v45 = vrot.slane %v3678_v9, %v694_v42  ;;  %v3940_v53 = vrot.slane %v3678_v9, %v895_v52 }
  0x52   : > { %vm2512_vm10 = vmpackc.low %vm499_vm8, %vm498_vm7  ;;  %vm478_vm7 = vcmp.eq.s32.totalorder %v3811_v35, %v3693_v14  ;;  %vm479_vm8 = vcmp.eq.s32.totalorder %v3814_v36, %v3693_v14 }
  0x53   : > { %vm2496_vm15 = vmpackc.low %vm483_vm12, %vm482_vm11 }
  0x54   : > { %2997 = vmatpush3.bf16.msk.msra.mxu0 %vm2492_vm3, %v3483_v20  ;;  %vm2514_vm0 = vmpackc.low %vm497_vm14, %vm496_vm13  ;;  %vm494_vm3 = vcmp.eq.s32.totalorder %v3799_v33, %v3693_v14  ;;  %vm476_vm13 = vcmp.eq.s32.totalorder %v3651_v3, %v3693_v14  ;;  %vm477_vm14 = vcmp.eq.s32.totalorder %v3833_v39, %v3693_v14 }
  0x55   : > { %2998 = vmatprep.subr.msk.bf16.mxu0 %vm2510_vm4, %v3483_v20  ;;  %vm495_vm4 = vcmp.eq.s32.totalorder %v3802_v34, %v3693_v14  ;;  %vm2498_vm5 = vmpackc.low %vm481_vm2, %vm480_vm1  ;;  %vm726_vm1 = vcmp.eq.s32.totalorder %v3666_v5, %v3860_v45  ;;  %vm727_vm2 = vcmp.eq.s32.totalorder %v3669_v6, %v3860_v45 }
  0x56   : > { %vm2516_vm6 = vmpackc.low %vm495_vm4, %vm494_vm3  ;;  %vm710_vm4 = vcmp.eq.s32.totalorder %v3672_v7, %v3860_v45 }
  0x57   : > { %vm2500_vm11 = vmpackc.low %vm479_vm8, %vm478_vm7  ;;  %vm725_vm7 = vcmp.eq.s32.totalorder %v3684_v11, %v3860_v45  ;;  %vm647_vm8 = vcmask 130048  }
  0x58   : > { %2999 = vmatpush3.bf16.msk.msra.mxu0 %vm2494_vm9, %v3483_v20  ;;  %vm492_vm9 = vcmp.eq.s32.totalorder %v3821_v37, %v3693_v14  ;;  %vm2570_vm3 = vmpackc.low %vm727_vm2, %vm726_vm1  ;;  %vm706_vm2 = vcmp.eq.s32.totalorder %v3705_v18, %v3860_v45 }
  0x59   : > { %3000 = vmatprep.subr.msk.bf16.mxu0 %vm2512_vm10, %v3483_v20  ;;  %vm493_vm10 = vcmp.eq.s32.totalorder %v3824_v38, %v3693_v14  ;;  %v4048_v14 = vrot.slane %v3678_v9, %v1096_v1 }
  0x5a   : > { %vm2518_vm12 = vmpackc.low %vm493_vm10, %vm492_vm9 }
  0x5c   : > { %3001 = vmatpush3.bf16.msk.msra.mxu0 %vm2496_vm15, %v3483_v20  ;;  %vm2502_vm15 = vmpackc.low %vm477_vm14, %vm476_vm13  ;;  %vm722_vm13 = vcmp.eq.s32.totalorder %v3696_v15, %v3860_v45  ;;  %vm723_vm14 = vcmp.eq.s32.totalorder %v3699_v16, %v3860_v45 }
  0x5d   : > { %3002 = vmatprep.subr.msk.bf16.mxu0 %vm2514_vm0, %v3483_v20  ;;  %vm3485_vm0 = vmmov 0   ;;  %vm2574_vm1 = vmpackc.low %vm723_vm14, %vm722_vm13 }
  0x5e   : > { %3192 = vmatprep.mubr.msk.bf16.mxu1 %vm3485_vm0, %v3484_v41 }
  0x60   : > { %3003 = vmatpush3.bf16.msk.msra.mxu0 %vm2498_vm5, %v3483_v20  ;;  %vm711_vm5 = vcmp.eq.s32.totalorder %v3675_v8, %v3860_v45 }
  0x61   : > { %3004 = vmatprep.subr.msk.bf16.mxu0 %vm2516_vm6, %v3483_v20  ;;  %vm724_vm6 = vcmp.eq.s32.totalorder %v3681_v10, %v3860_v45  ;;  %vm2554_vm9 = vmpackc.low %vm711_vm5, %vm710_vm4  ;;  %vm720_vm4 = vcmp.eq.s32.totalorder %v3733_v21, %v3860_v45  ;;  %vm721_vm5 = vcmp.eq.s32.totalorder %v3736_v22, %v3860_v45 }
  0x62   : > { %vm2572_vm10 = vmpackc.low %vm725_vm7, %vm724_vm6 }
  0x63   : > { %vm2576_vm7 = vmpackc.low %vm721_vm5, %vm720_vm4 }
  0x64   : > { %3005 = vmatpush3.bf16.msk.msra.mxu0 %vm2500_vm11, %v3483_v20  ;;  %vm708_vm11 = vcmp.eq.s32.totalorder %v3687_v12, %v3860_v45 }
  0x65   : > { %3006 = vmatprep.subr.msk.bf16.mxu0 %vm2518_vm12, %v3483_v20  ;;  %vm709_vm12 = vcmp.eq.s32.totalorder %v3690_v13, %v3860_v45 }
  0x68   : > { %3007 = vmatpush3.bf16.msk.msra.mxu0 %vm2502_vm15, %v3483_v20  ;;  %vm2556_vm15 = vmpackc.low %vm709_vm12, %vm708_vm11  ;;  %vm718_vm11 = vcmp.eq.s32.totalorder %v3755_v25, %v3860_v45  ;;  %vm719_vm12 = vcmp.eq.s32.totalorder %v3758_v26, %v3860_v45 }
  0x69   : > { %3196 = vmatprep.subr.bf16.mxu0 %v3484_v41  ;;  %vm2578_vm14 = vmpackc.low %vm719_vm12, %vm718_vm11 }
  0x6b   : > { %631 = vmatmul.mubr.bf16.vlgmr.msra.gmra.mxu0 %v3848_v40 }
  0x6c   : > { %3198 = vmatprep.mubr.msk.bf16.mxu0 %vm3485_vm0, %v3484_v41 }
 0x12b   : > { %v3008_v43 = vpop.f32.mrf.mxu0 }
 0x12d   : > { %v3009_v44 = vpop.f32.mrf.mxu0 }
 0x12e   : > { %v3010_v48 = vadd.f32 %v3009_v44, %v3008_v43 }
 0x12f   : > { %v3011_v46 = vpop.f32.mrf.mxu0 }
 0x131   : > { %v3012_v47 = vpop.f32.mrf.mxu0 }
 0x132   : > { %v3013_v49 = vadd.f32 %v3012_v47, %v3011_v46 }
 0x134   : > { %v641_v50 = vpack.c.bf16 %v3013_v49, %v3010_v48 }
 0x136   : > { %3191 = vmatpush3.bf16.msra.mxu1 %v641_v50 }
 0x137   : > { %3016 = vmatprep.subr.msk.bf16.mxu1 %vm2570_vm3, %v3483_v20  ;;  %vm707_vm3 = vcmp.eq.s32.totalorder %v3708_v19, %v3860_v45 }
 0x138   : > { %vm2558_vm6 = vmpackc.low %vm707_vm3, %vm706_vm2  ;;  %vm716_vm2 = vcmp.eq.s32.totalorder %v3777_v29, %v3860_v45  ;;  %vm717_vm3 = vcmp.eq.s32.totalorder %v3780_v30, %v3860_v45 }
 0x139   : > { %3193 = vmatmul.mubr.msk.bf16.vlgmr.msra.gmra.mxu1 %vm647_vm8, %v3870_v51  ;;  %vm2580_vm5 = vmpackc.low %vm717_vm3, %vm716_vm2 }
 0x13a   : > { %3017 = vmatpush3.bf16.msk.msra.mxu1 %vm2554_vm9, %v3483_v20  ;;  %840 = vmatprep.mubr.bf16.mxu1 %v3702_v17  ;;  %vm704_vm9 = vcmp.eq.s32.totalorder %v3745_v23, %v3860_v45 }
 0x13b   : > { %3018 = vmatprep.subr.msk.bf16.mxu1 %vm2572_vm10, %v3483_v20  ;;  %vm705_vm10 = vcmp.eq.s32.totalorder %v3748_v24, %v3860_v45 }
 0x13c   : > { %vm2560_vm13 = vmpackc.low %vm705_vm10, %vm704_vm9  ;;  %vm714_vm9 = vcmp.eq.s32.totalorder %v3799_v33, %v3860_v45  ;;  %vm715_vm10 = vcmp.eq.s32.totalorder %v3802_v34, %v3860_v45 }
 0x13d   : > { %vm2582_vm12 = vmpackc.low %vm715_vm10, %vm714_vm9 }
 0x13e   : > { %3019 = vmatpush3.bf16.msk.msra.mxu1 %vm2556_vm15, %v3483_v20  ;;  %vm702_vm15 = vcmp.eq.s32.totalorder %v3767_v27, %v3860_v45 }
 0x13f   : > { %3020 = vmatprep.subr.msk.bf16.mxu1 %vm2574_vm1, %v3483_v20  ;;  %vm703_vm1 = vcmp.eq.s32.totalorder %v3770_v28, %v3860_v45 }
 0x140   : > { %vm2562_vm4 = vmpackc.low %vm703_vm1, %vm702_vm15  ;;  %vm712_vm15 = vcmp.eq.s32.totalorder %v3821_v37, %v3860_v45  ;;  %vm713_vm1 = vcmp.eq.s32.totalorder %v3824_v38, %v3860_v45 }
 0x141   : > { %vm2584_vm3 = vmpackc.low %vm713_vm1, %vm712_vm15 }
 0x142   : > { %3021 = vmatpush3.bf16.msk.msra.mxu1 %vm2558_vm6, %v3483_v20  ;;  %vm700_vm6 = vcmp.eq.s32.totalorder %v3789_v31, %v3860_v45 }
 0x143   : > { %3022 = vmatprep.subr.msk.bf16.mxu1 %vm2576_vm7, %v3483_v20  ;;  %vm701_vm7 = vcmp.eq.s32.totalorder %v3792_v32, %v3860_v45 }
 0x144   : > { %vm2564_vm11 = vmpackc.low %vm701_vm7, %vm700_vm6  ;;  %vm927_vm6 = vcmp.eq.s32.totalorder %v3666_v5, %v3940_v53  ;;  %vm928_vm7 = vcmp.eq.s32.totalorder %v3669_v6, %v3940_v53 }
 0x145   : > { %vm2635_vm10 = vmpackc.low %vm928_vm7, %vm927_vm6 }
 0x146   : > { %3023 = vmatpush3.bf16.msk.msra.mxu1 %vm2560_vm13, %v3483_v20  ;;  %vm698_vm13 = vcmp.eq.s32.totalorder %v3811_v35, %v3860_v45 }
 0x147   : > { %3024 = vmatprep.subr.msk.bf16.mxu1 %vm2578_vm14, %v3483_v20  ;;  %vm699_vm14 = vcmp.eq.s32.totalorder %v3814_v36, %v3860_v45 }
 0x148   : > { %vm2566_vm2 = vmpackc.low %vm699_vm14, %vm698_vm13  ;;  %vm925_vm13 = vcmp.eq.s32.totalorder %v3681_v10, %v3940_v53  ;;  %vm926_vm14 = vcmp.eq.s32.totalorder %v3684_v11, %v3940_v53 }
 0x149   : > { %vm2637_vm1 = vmpackc.low %vm926_vm14, %vm925_vm13 }
 0x14a   : > { %3025 = vmatpush3.bf16.msk.msra.mxu1 %vm2562_vm4, %v3483_v20  ;;  %vm696_vm4 = vcmp.eq.s32.totalorder %v3651_v3, %v3860_v45 }
 0x14b   : > { %3026 = vmatprep.subr.msk.bf16.mxu1 %vm2580_vm5, %v3483_v20  ;;  %vm697_vm5 = vcmp.eq.s32.totalorder %v3833_v39, %v3860_v45 }
 0x14c   : > { %vm2568_vm9 = vmpackc.low %vm697_vm5, %vm696_vm4  ;;  %vm923_vm4 = vcmp.eq.s32.totalorder %v3696_v15, %v3940_v53  ;;  %vm924_vm5 = vcmp.eq.s32.totalorder %v3699_v16, %v3940_v53 }
 0x14d   : > { %vm2639_vm7 = vmpackc.low %vm924_vm5, %vm923_vm4 }
 0x14e   : > { %3027 = vmatpush3.bf16.msk.msra.mxu1 %vm2564_vm11, %v3483_v20  ;;  %vm911_vm11 = vcmp.eq.s32.totalorder %v3672_v7, %v3940_v53 }
 0x14f   : > { %3028 = vmatprep.subr.msk.bf16.mxu1 %vm2582_vm12, %v3483_v20  ;;  %vm912_vm12 = vcmp.eq.s32.totalorder %v3675_v8, %v3940_v53 }
 0x150   : > { %vm2619_vm15 = vmpackc.low %vm912_vm12, %vm911_vm11  ;;  %vm921_vm11 = vcmp.eq.s32.totalorder %v3733_v21, %v3940_v53  ;;  %vm922_vm12 = vcmp.eq.s32.totalorder %v3736_v22, %v3940_v53 }
 0x151   : > { %vm2641_vm14 = vmpackc.low %vm922_vm12, %vm921_vm11 }
 0x152   : > { %3029 = vmatpush3.bf16.msk.msra.mxu1 %vm2566_vm2, %v3483_v20  ;;  %vm909_vm2 = vcmp.eq.s32.totalorder %v3687_v12, %v3940_v53 }
 0x153   : > { %3030 = vmatprep.subr.msk.bf16.mxu1 %vm2584_vm3, %v3483_v20  ;;  %vm910_vm3 = vcmp.eq.s32.totalorder %v3690_v13, %v3940_v53 }
 0x154   : > { %vm2621_vm6 = vmpackc.low %vm910_vm3, %vm909_vm2  ;;  %vm919_vm2 = vcmp.eq.s32.totalorder %v3755_v25, %v3940_v53  ;;  %vm920_vm3 = vcmp.eq.s32.totalorder %v3758_v26, %v3940_v53 }
 0x155   : > { %vm2643_vm5 = vmpackc.low %vm920_vm3, %vm919_vm2 }
 0x156   : > { %3031 = vmatpush3.bf16.msk.msra.mxu1 %vm2568_vm9, %v3483_v20  ;;  %vm907_vm9 = vcmp.eq.s32.totalorder %v3705_v18, %v3940_v53 }
 0x157   : > { %3040 = vmatprep.subr.msk.bf16.mxu1 %vm2635_vm10, %v3483_v20  ;;  %vm908_vm10 = vcmp.eq.s32.totalorder %v3708_v19, %v3940_v53 }
 0x158   : > { %vm2623_vm13 = vmpackc.low %vm908_vm10, %vm907_vm9  ;;  %vm917_vm9 = vcmp.eq.s32.totalorder %v3777_v29, %v3940_v53  ;;  %vm918_vm10 = vcmp.eq.s32.totalorder %v3780_v30, %v3940_v53 }
 0x159   : > { %841 = vmatmul.mubr.bf16.vlgmr.msra.gmra.mxu1 %v3848_v40  ;;  %vm2645_vm12 = vmpackc.low %vm918_vm10, %vm917_vm9 }
 0x15a   : > { %3041 = vmatpush3.bf16.msk.msra.mxu1 %vm2619_vm15, %v3483_v20  ;;  %1041 = vmatprep.mubr.bf16.mxu1 %v3702_v17  ;;  %vm905_vm15 = vcmp.eq.s32.totalorder %v3745_v23, %v3940_v53 }
 0x15b   : > { %3042 = vmatprep.subr.msk.bf16.mxu1 %vm2637_vm1, %v3483_v20  ;;  %vm906_vm1 = vcmp.eq.s32.totalorder %v3748_v24, %v3940_v53 }
 0x15c   : > { %vm2625_vm4 = vmpackc.low %vm906_vm1, %vm905_vm15  ;;  %vm915_vm15 = vcmp.eq.s32.totalorder %v3799_v33, %v3940_v53  ;;  %vm916_vm1 = vcmp.eq.s32.totalorder %v3802_v34, %v3940_v53 }
 0x15d   : > { %vm2647_vm3 = vmpackc.low %vm916_vm1, %vm915_vm15  ;;  %vm1129_vm15 = vcmp.eq.s32.totalorder %v3669_v6, %v4048_v14 }
 0x15e   : > { %3043 = vmatpush3.bf16.msk.msra.mxu1 %vm2621_vm6, %v3483_v20  ;;  %vm903_vm6 = vcmp.eq.s32.totalorder %v3767_v27, %v3940_v53 }
 0x15f   : > { %3044 = vmatprep.subr.msk.bf16.mxu1 %vm2639_vm7, %v3483_v20  ;;  %vm904_vm7 = vcmp.eq.s32.totalorder %v3770_v28, %v3940_v53 }
 0x160   : > { %vm2627_vm11 = vmpackc.low %vm904_vm7, %vm903_vm6  ;;  %vm913_vm6 = vcmp.eq.s32.totalorder %v3821_v37, %v3940_v53  ;;  %vm914_vm7 = vcmp.eq.s32.totalorder %v3824_v38, %v3940_v53 }
 0x161   : > { %vm2649_vm10 = vmpackc.low %vm914_vm7, %vm913_vm6 }
 0x162   : > { %3045 = vmatpush3.bf16.msk.msra.mxu1 %vm2623_vm13, %v3483_v20  ;;  %vm901_vm13 = vcmp.eq.s32.totalorder %v3789_v31, %v3940_v53 }
 0x163   : > { %3046 = vmatprep.subr.msk.bf16.mxu1 %vm2641_vm14, %v3483_v20  ;;  %vm902_vm14 = vcmp.eq.s32.totalorder %v3792_v32, %v3940_v53 }
 0x164   : > { %vm2629_vm2 = vmpackc.low %vm902_vm14, %vm901_vm13  ;;  %vm1128_vm14 = vcmp.eq.s32.totalorder %v3666_v5, %v4048_v14 }
 0x165   : > { %vm2700_vm1 = vmpackc.low %vm1129_vm15, %vm1128_vm14  ;;  %vm1108_vm15 = vcmp.eq.s32.totalorder %v3705_v18, %v4048_v14 }
 0x166   : > { %3047 = vmatpush3.bf16.msk.msra.mxu1 %vm2625_vm4, %v3483_v20  ;;  %vm899_vm4 = vcmp.eq.s32.totalorder %v3811_v35, %v3940_v53 }
 0x167   : > { %3048 = vmatprep.subr.msk.bf16.mxu1 %vm2643_vm5, %v3483_v20  ;;  %vm900_vm5 = vcmp.eq.s32.totalorder %v3814_v36, %v3940_v53 }
 0x168   : > { %vm2631_vm9 = vmpackc.low %vm900_vm5, %vm899_vm4  ;;  %vm1126_vm4 = vcmp.eq.s32.totalorder %v3681_v10, %v4048_v14  ;;  %vm1127_vm5 = vcmp.eq.s32.totalorder %v3684_v11, %v4048_v14 }
 0x169   : > { %vm2702_vm7 = vmpackc.low %vm1127_vm5, %vm1126_vm4 }
 0x16a   : > { %3049 = vmatpush3.bf16.msk.msra.mxu1 %vm2627_vm11, %v3483_v20  ;;  %vm897_vm11 = vcmp.eq.s32.totalorder %v3651_v3, %v3940_v53 }
 0x16b   : > { %3050 = vmatprep.subr.msk.bf16.mxu1 %vm2645_vm12, %v3483_v20  ;;  %vm898_vm12 = vcmp.eq.s32.totalorder %v3833_v39, %v3940_v53 }
 0x16c   : > { %vm2633_vm13 = vmpackc.low %vm898_vm12, %vm897_vm11  ;;  %vm1124_vm11 = vcmp.eq.s32.totalorder %v3696_v15, %v4048_v14  ;;  %vm1125_vm12 = vcmp.eq.s32.totalorder %v3699_v16, %v4048_v14 }
 0x16d   : > { %vm2704_vm14 = vmpackc.low %vm1125_vm12, %vm1124_vm11 }
 0x16e   : > { %3051 = vmatpush3.bf16.msk.msra.mxu1 %vm2629_vm2, %v3483_v20  ;;  %vm1112_vm2 = vcmp.eq.s32.totalorder %v3672_v7, %v4048_v14 }
 0x16f   : > { %3052 = vmatprep.subr.msk.bf16.mxu1 %vm2647_vm3, %v3483_v20  ;;  %vm1113_vm3 = vcmp.eq.s32.totalorder %v3675_v8, %v4048_v14 }
 0x170   : > { %vm2684_vm6 = vmpackc.low %vm1113_vm3, %vm1112_vm2  ;;  %vm1122_vm2 = vcmp.eq.s32.totalorder %v3733_v21, %v4048_v14  ;;  %vm1123_vm3 = vcmp.eq.s32.totalorder %v3736_v22, %v4048_v14 }
 0x171   : > { %vm2706_vm5 = vmpackc.low %vm1123_vm3, %vm1122_vm2 }
 0x172   : > { %3053 = vmatpush3.bf16.msk.msra.mxu1 %vm2631_vm9, %v3483_v20  ;;  %vm1110_vm9 = vcmp.eq.s32.totalorder %v3687_v12, %v4048_v14 }
 0x173   : > { %3054 = vmatprep.subr.msk.bf16.mxu1 %vm2649_vm10, %v3483_v20  ;;  %vm1111_vm10 = vcmp.eq.s32.totalorder %v3690_v13, %v4048_v14 }
 0x176   : > { %3055 = vmatpush3.bf16.msk.msra.mxu1 %vm2633_vm13, %v3483_v20  ;;  %vm2686_vm13 = vmpackc.low %vm1111_vm10, %vm1110_vm9  ;;  %vm1120_vm9 = vcmp.eq.s32.totalorder %v3755_v25, %v4048_v14  ;;  %vm1121_vm10 = vcmp.eq.s32.totalorder %v3758_v26, %v4048_v14 }
 0x177   : > { %3208 = vmatprep.subr.bf16.mxu1 %v3484_v41  ;;  %vm2708_vm12 = vmpackc.low %vm1121_vm10, %vm1120_vm9 }
 0x179   : > { %1042 = vmatmul.mubr.bf16.vlgmr.msra.gmra.mxu1 %v3848_v40 }
 0x17a   : > { %3210 = vmatprep.mubr.msk.bf16.mxu1 %vm3485_vm0, %v3484_v41 }
 0x1f9   : > { %v4037_v54 = vpop.f32.mrf.mxu1 }
 0x1fb   : > { %v3194_v55 = vpop.f32.mrf.mxu1 }
 0x1fd   : > { %v4039_v56 = vpop.f32.mrf.mxu1 }
 0x1ff   : > { %v3195_v57 = vpop.f32.mrf.mxu1 }
 0x219   : > { %v3032_v58 = vpop.f32.mrf.mxu1 }
 0x21b   : > { %v3033_v59 = vpop.f32.mrf.mxu1 }
 0x21c   : > { %v3034_v62 = vadd.f32 %v3033_v59, %v3032_v58 }
 0x21d   : > { %v3035_v60 = vpop.f32.mrf.mxu1 }
 0x21f   : > { %v3036_v61 = vpop.f32.mrf.mxu1 }
 0x220   : > { %v3037_v63 = vadd.f32 %v3036_v61, %v3035_v60 }
 0x222   : > { %v849_v0 = vpack.c.bf16 %v3037_v63, %v3034_v62  ;;  %v1297_v62 = vsub.s32 4, %v3651_v3 }
 0x224   : > { %3197 = vmatpush3.bf16.msra.mxu0 %v849_v0  ;;  %v4145_v1 = vrot.slane %v3678_v9, %v1297_v62 }
 0x225   : > { %3202 = vmatprep.subr.bf16.mxu0 %v3484_v41 }
 0x227   : > { %3199 = vmatmul.mubr.msk.bf16.vlgmr.msra.gmra.mxu0 %vm647_vm8, %v3870_v51 }
 0x228   : > { %3204 = vmatprep.mubr.msk.bf16.mxu0 %vm3485_vm0, %v3484_v41 }
 0x239   : > { %v3056_v2 = vpop.f32.mrf.mxu1 }
 0x23b   : > { %v3057_v4 = vpop.f32.mrf.mxu1 }
 0x23c   : > { %v3058_v44 = vadd.f32 %v3057_v4, %v3056_v2 }
 0x23d   : > { %v3059_v42 = vpop.f32.mrf.mxu1 }
 0x23f   : > { %v3060_v43 = vpop.f32.mrf.mxu1 }
 0x240   : > { %v3061_v45 = vadd.f32 %v3060_v43, %v3059_v42 }
 0x242   : > { %v1050_v46 = vpack.c.bf16 %v3061_v45, %v3058_v44 }
 0x244   : > { %3203 = vmatpush3.bf16.msra.mxu0 %v1050_v46 }
 0x245   : > { %3064 = vmatprep.subr.msk.bf16.mxu0 %vm2700_vm1, %v3483_v20  ;;  %vm1109_vm1 = vcmp.eq.s32.totalorder %v3708_v19, %v4048_v14 }
 0x246   : > { %vm2688_vm4 = vmpackc.low %vm1109_vm1, %vm1108_vm15  ;;  %vm1118_vm15 = vcmp.eq.s32.totalorder %v3777_v29, %v4048_v14  ;;  %vm1119_vm1 = vcmp.eq.s32.totalorder %v3780_v30, %v4048_v14 }
 0x247   : > { %3205 = vmatmul.mubr.msk.bf16.vlgmr.msra.gmra.mxu0 %vm647_vm8, %v3870_v51  ;;  %vm2710_vm3 = vmpackc.low %vm1119_vm1, %vm1118_vm15 }
 0x248   : > { %3065 = vmatpush3.bf16.msk.msra.mxu0 %vm2684_vm6, %v3483_v20  ;;  %1242 = vmatprep.mubr.bf16.mxu0 %v3702_v17  ;;  %vm1106_vm6 = vcmp.eq.s32.totalorder %v3745_v23, %v4048_v14 }
 0x249   : > { %3066 = vmatprep.subr.msk.bf16.mxu0 %vm2702_vm7, %v3483_v20  ;;  %vm1107_vm7 = vcmp.eq.s32.totalorder %v3748_v24, %v4048_v14 }
 0x24a   : > { %vm2690_vm11 = vmpackc.low %vm1107_vm7, %vm1106_vm6  ;;  %vm1116_vm6 = vcmp.eq.s32.totalorder %v3799_v33, %v4048_v14  ;;  %vm1117_vm7 = vcmp.eq.s32.totalorder %v3802_v34, %v4048_v14 }
 0x24b   : > { %vm2712_vm10 = vmpackc.low %vm1117_vm7, %vm1116_vm6  ;;  %vm1330_vm6 = vcmp.eq.s32.totalorder %v3669_v6, %v4145_v1 }
 0x24c   : > { %3067 = vmatpush3.bf16.msk.msra.mxu0 %vm2686_vm13, %v3483_v20  ;;  %vm1104_vm13 = vcmp.eq.s32.totalorder %v3767_v27, %v4048_v14 }
 0x24d   : > { %3068 = vmatprep.subr.msk.bf16.mxu0 %vm2704_vm14, %v3483_v20  ;;  %vm1105_vm14 = vcmp.eq.s32.totalorder %v3770_v28, %v4048_v14 }
 0x24e   : > { %vm2692_vm2 = vmpackc.low %vm1105_vm14, %vm1104_vm13  ;;  %vm1114_vm13 = vcmp.eq.s32.totalorder %v3821_v37, %v4048_v14  ;;  %vm1115_vm14 = vcmp.eq.s32.totalorder %v3824_v38, %v4048_v14 }
 0x24f   : > { %vm2714_vm1 = vmpackc.low %vm1115_vm14, %vm1114_vm13 }
 0x250   : > { %3069 = vmatpush3.bf16.msk.msra.mxu0 %vm2688_vm4, %v3483_v20  ;;  %vm1102_vm4 = vcmp.eq.s32.totalorder %v3789_v31, %v4048_v14 }
 0x251   : > { %3070 = vmatprep.subr.msk.bf16.mxu0 %vm2706_vm5, %v3483_v20  ;;  %vm1103_vm5 = vcmp.eq.s32.totalorder %v3792_v32, %v4048_v14 }
 0x252   : > { %vm2694_vm9 = vmpackc.low %vm1103_vm5, %vm1102_vm4  ;;  %vm1329_vm5 = vcmp.eq.s32.totalorder %v3666_v5, %v4145_v1 }
 0x253   : > { %vm2765_vm7 = vmpackc.low %vm1330_vm6, %vm1329_vm5  ;;  %vm1309_vm6 = vcmp.eq.s32.totalorder %v3705_v18, %v4145_v1 }
 0x254   : > { %3071 = vmatpush3.bf16.msk.msra.mxu0 %vm2690_vm11, %v3483_v20  ;;  %vm1100_vm11 = vcmp.eq.s32.totalorder %v3811_v35, %v4048_v14 }
 0x255   : > { %3072 = vmatprep.subr.msk.bf16.mxu0 %vm2708_vm12, %v3483_v20  ;;  %vm1101_vm12 = vcmp.eq.s32.totalorder %v3814_v36, %v4048_v14 }
 0x256   : > { %vm2696_vm15 = vmpackc.low %vm1101_vm12, %vm1100_vm11  ;;  %vm1327_vm11 = vcmp.eq.s32.totalorder %v3681_v10, %v4145_v1  ;;  %vm1328_vm12 = vcmp.eq.s32.totalorder %v3684_v11, %v4145_v1 }
 0x257   : > { %vm2767_vm14 = vmpackc.low %vm1328_vm12, %vm1327_vm11 }
 0x258   : > { %3073 = vmatpush3.bf16.msk.msra.mxu0 %vm2692_vm2, %v3483_v20  ;;  %vm1098_vm2 = vcmp.eq.s32.totalorder %v3651_v3, %v4048_v14 }
 0x259   : > { %3074 = vmatprep.subr.msk.bf16.mxu0 %vm2710_vm3, %v3483_v20  ;;  %vm1099_vm3 = vcmp.eq.s32.totalorder %v3833_v39, %v4048_v14 }
 0x25a   : > { %vm2698_vm4 = vmpackc.low %vm1099_vm3, %vm1098_vm2  ;;  %vm1325_vm2 = vcmp.eq.s32.totalorder %v3696_v15, %v4145_v1  ;;  %vm1326_vm3 = vcmp.eq.s32.totalorder %v3699_v16, %v4145_v1 }
 0x25b   : > { %vm2769_vm5 = vmpackc.low %vm1326_vm3, %vm1325_vm2 }
 0x25c   : > { %3075 = vmatpush3.bf16.msk.msra.mxu0 %vm2694_vm9, %v3483_v20  ;;  %vm1313_vm9 = vcmp.eq.s32.totalorder %v3672_v7, %v4145_v1 }
 0x25d   : > { %3076 = vmatprep.subr.msk.bf16.mxu0 %vm2712_vm10, %v3483_v20  ;;  %vm1314_vm10 = vcmp.eq.s32.totalorder %v3675_v8, %v4145_v1 }
 0x25e   : > { %vm2749_vm13 = vmpackc.low %vm1314_vm10, %vm1313_vm9  ;;  %vm1323_vm9 = vcmp.eq.s32.totalorder %v3733_v21, %v4145_v1  ;;  %vm1324_vm10 = vcmp.eq.s32.totalorder %v3736_v22, %v4145_v1 }
 0x25f   : > { %vm2771_vm12 = vmpackc.low %vm1324_vm10, %vm1323_vm9 }
 0x260   : > { %3077 = vmatpush3.bf16.msk.msra.mxu0 %vm2696_vm15, %v3483_v20  ;;  %vm1311_vm15 = vcmp.eq.s32.totalorder %v3687_v12, %v4145_v1 }
 0x261   : > { %3078 = vmatprep.subr.msk.bf16.mxu0 %vm2714_vm1, %v3483_v20  ;;  %vm1312_vm1 = vcmp.eq.s32.totalorder %v3690_v13, %v4145_v1 }
 0x264   : > { %3079 = vmatpush3.bf16.msk.msra.mxu0 %vm2698_vm4, %v3483_v20  ;;  %vm2751_vm4 = vmpackc.low %vm1312_vm1, %vm1311_vm15  ;;  %vm1321_vm15 = vcmp.eq.s32.totalorder %v3755_v25, %v4145_v1  ;;  %vm1322_vm1 = vcmp.eq.s32.totalorder %v3758_v26, %v4145_v1 }
 0x265   : > { %3214 = vmatprep.subr.bf16.mxu0 %v3484_v41  ;;  %vm2773_vm3 = vmpackc.low %vm1322_vm1, %vm1321_vm15 }
 0x267   : > { %1243 = vmatmul.mubr.bf16.vlgmr.msra.gmra.mxu0 %v3848_v40 }
 0x268   : > { %3216 = vmatprep.mubr.msk.bf16.mxu0 %vm3485_vm0, %v3484_v41 }
 0x2e7   : > { %v884_v47 = vpop.f32.mrf.mxu0 }
 0x2e8   : > { %v891_v52 = vmax.f32 %v4037_v54, %v884_v47 }
 0x2e9   : > { %v3200_v48 = vpop.f32.mrf.mxu0 }
 0x2ea   : > { %v1498_v48 = vsub.s32 5, %v3651_v3 }
 0x2eb   : > { %v887_v49 = vpop.f32.mrf.mxu0 }
 0x2ec   : > { %v892_v58 = vmax.f32 %v4039_v56, %v887_v49 }
 0x2ed   : > { %v3201_v50 = vpop.f32.mrf.mxu0 }
 0x307   : > { %v1085_v53 = vpop.f32.mrf.mxu0 }
 0x308   : > { %v4138_v55 = vmax.f32 %v891_v52, %v1085_v53  ;;  %v4244_v52 = vrot.slane %v3678_v9, %v1498_v48 }
 0x309   : > { %v3206_v57 = vpop.f32.mrf.mxu0 }
 0x30b   : > { %v1088_v59 = vpop.f32.mrf.mxu0 }
 0x30c   : > { %v4141_v60 = vmax.f32 %v892_v58, %v1088_v59 }
 0x30d   : > { %v3207_v61 = vpop.f32.mrf.mxu0 }
 0x327   : > { %v3080_v63 = vpop.f32.mrf.mxu0 }
 0x329   : > { %v3081_v0 = vpop.f32.mrf.mxu0 }
 0x32a   : > { %v3082_v54 = vadd.f32 %v3081_v0, %v3080_v63 }
 0x32b   : > { %v3083_v2 = vpop.f32.mrf.mxu0 }
 0x32d   : > { %v3084_v4 = vpop.f32.mrf.mxu0 }
 0x32e   : > { %v3085_v56 = vadd.f32 %v3084_v4, %v3083_v2  ;;  %v1699_v2 = vsub.s32 6, %v3651_v3 }
 0x330   : > { %v1251_v14 = vpack.c.bf16 %v3085_v56, %v3082_v54  ;;  %v4345_v56 = vld [vmem:[%s3663_s18] sm:$0xff]  ;;  %s2299_s18 = scalar_lea.sflag [#allocation5], %s3639_s19 }
 0x332   : > { %3209 = vmatpush3.bf16.msra.mxu1 %v1251_v14  ;;  %v4348_v14 = vrot.slane %v4345_v56, %v1699_v2 }
 0x333   : > { %3088 = vmatprep.subr.msk.bf16.mxu1 %vm2765_vm7, %v3483_v20  ;;  %vm1310_vm7 = vcmp.eq.s32.totalorder %v3708_v19, %v4145_v1 }
 0x334   : > { %vm2753_vm11 = vmpackc.low %vm1310_vm7, %vm1309_vm6  ;;  %vm1319_vm6 = vcmp.eq.s32.totalorder %v3777_v29, %v4145_v1  ;;  %vm1320_vm7 = vcmp.eq.s32.totalorder %v3780_v30, %v4145_v1 }
 0x335   : > { %3211 = vmatmul.mubr.msk.bf16.vlgmr.msra.gmra.mxu1 %vm647_vm8, %v3870_v51  ;;  %vm2775_vm10 = vmpackc.low %vm1320_vm7, %vm1319_vm6 }
 0x336   : > { %3089 = vmatpush3.bf16.msk.msra.mxu1 %vm2749_vm13, %v3483_v20  ;;  %1443 = vmatprep.mubr.bf16.mxu1 %v3702_v17  ;;  %vm1307_vm13 = vcmp.eq.s32.totalorder %v3745_v23, %v4145_v1 }
 0x337   : > { %3090 = vmatprep.subr.msk.bf16.mxu1 %vm2767_vm14, %v3483_v20  ;;  %vm1308_vm14 = vcmp.eq.s32.totalorder %v3748_v24, %v4145_v1 }
 0x338   : > { %vm2755_vm2 = vmpackc.low %vm1308_vm14, %vm1307_vm13  ;;  %vm1317_vm13 = vcmp.eq.s32.totalorder %v3799_v33, %v4145_v1  ;;  %vm1318_vm14 = vcmp.eq.s32.totalorder %v3802_v34, %v4145_v1 }
 0x339   : > { %vm2777_vm1 = vmpackc.low %vm1318_vm14, %vm1317_vm13  ;;  %vm1531_vm13 = vcmp.eq.s32.totalorder %v3669_v6, %v4244_v52 }
 0x33a   : > { %3091 = vmatpush3.bf16.msk.msra.mxu1 %vm2751_vm4, %v3483_v20  ;;  %vm1305_vm4 = vcmp.eq.s32.totalorder %v3767_v27, %v4145_v1 }
 0x33b   : > { %3092 = vmatprep.subr.msk.bf16.mxu1 %vm2769_vm5, %v3483_v20  ;;  %vm1306_vm5 = vcmp.eq.s32.totalorder %v3770_v28, %v4145_v1 }
 0x33c   : > { %vm2757_vm9 = vmpackc.low %vm1306_vm5, %vm1305_vm4  ;;  %vm1315_vm4 = vcmp.eq.s32.totalorder %v3821_v37, %v4145_v1  ;;  %vm1316_vm5 = vcmp.eq.s32.totalorder %v3824_v38, %v4145_v1 }
 0x33d   : > { %vm2779_vm7 = vmpackc.low %vm1316_vm5, %vm1315_vm4 }
 0x33e   : > { %3093 = vmatpush3.bf16.msk.msra.mxu1 %vm2753_vm11, %v3483_v20  ;;  %vm1303_vm11 = vcmp.eq.s32.totalorder %v3789_v31, %v4145_v1 }
 0x33f   : > { %3094 = vmatprep.subr.msk.bf16.mxu1 %vm2771_vm12, %v3483_v20  ;;  %vm1304_vm12 = vcmp.eq.s32.totalorder %v3792_v32, %v4145_v1 }
 0x340   : > { %vm2759_vm15 = vmpackc.low %vm1304_vm12, %vm1303_vm11  ;;  %vm1530_vm12 = vcmp.eq.s32.totalorder %v3666_v5, %v4244_v52 }
 0x341   : > { %vm2830_vm14 = vmpackc.low %vm1531_vm13, %vm1530_vm12  ;;  %vm1510_vm13 = vcmp.eq.s32.totalorder %v3705_v18, %v4244_v52 }
 0x342   : > { %3095 = vmatpush3.bf16.msk.msra.mxu1 %vm2755_vm2, %v3483_v20  ;;  %vm1301_vm2 = vcmp.eq.s32.totalorder %v3811_v35, %v4145_v1 }
 0x343   : > { %3096 = vmatprep.subr.msk.bf16.mxu1 %vm2773_vm3, %v3483_v20  ;;  %vm1302_vm3 = vcmp.eq.s32.totalorder %v3814_v36, %v4145_v1 }
 0x344   : > { %vm2761_vm6 = vmpackc.low %vm1302_vm3, %vm1301_vm2  ;;  %vm1528_vm2 = vcmp.eq.s32.totalorder %v3681_v10, %v4244_v52  ;;  %vm1529_vm3 = vcmp.eq.s32.totalorder %v3684_v11, %v4244_v52 }
 0x345   : > { %vm2832_vm5 = vmpackc.low %vm1529_vm3, %vm1528_vm2 }
 0x346   : > { %3097 = vmatpush3.bf16.msk.msra.mxu1 %vm2757_vm9, %v3483_v20  ;;  %vm1299_vm9 = vcmp.eq.s32.totalorder %v3651_v3, %v4145_v1 }
 0x347   : > { %3098 = vmatprep.subr.msk.bf16.mxu1 %vm2775_vm10, %v3483_v20  ;;  %vm1300_vm10 = vcmp.eq.s32.totalorder %v3833_v39, %v4145_v1 }
 0x348   : > { %vm2763_vm11 = vmpackc.low %vm1300_vm10, %vm1299_vm9  ;;  %vm1526_vm9 = vcmp.eq.s32.totalorder %v3696_v15, %v4244_v52  ;;  %vm1527_vm10 = vcmp.eq.s32.totalorder %v3699_v16, %v4244_v52 }
 0x349   : > { %vm2834_vm12 = vmpackc.low %vm1527_vm10, %vm1526_vm9 }
 0x34a   : > { %3099 = vmatpush3.bf16.msk.msra.mxu1 %vm2759_vm15, %v3483_v20  ;;  %vm1514_vm15 = vcmp.eq.s32.totalorder %v3672_v7, %v4244_v52 }
 0x34b   : > { %3100 = vmatprep.subr.msk.bf16.mxu1 %vm2777_vm1, %v3483_v20  ;;  %vm1515_vm1 = vcmp.eq.s32.totalorder %v3675_v8, %v4244_v52 }
 0x34c   : > { %vm2814_vm4 = vmpackc.low %vm1515_vm1, %vm1514_vm15  ;;  %vm1524_vm15 = vcmp.eq.s32.totalorder %v3733_v21, %v4244_v52  ;;  %vm1525_vm1 = vcmp.eq.s32.totalorder %v3736_v22, %v4244_v52 }
 0x34d   : > { %vm2836_vm3 = vmpackc.low %vm1525_vm1, %vm1524_vm15 }
 0x34e   : > { %3101 = vmatpush3.bf16.msk.msra.mxu1 %vm2761_vm6, %v3483_v20  ;;  %vm1512_vm6 = vcmp.eq.s32.totalorder %v3687_v12, %v4244_v52 }
 0x34f   : > { %3102 = vmatprep.subr.msk.bf16.mxu1 %vm2779_vm7, %v3483_v20  ;;  %vm1513_vm7 = vcmp.eq.s32.totalorder %v3690_v13, %v4244_v52 }
 0x352   : > { %3103 = vmatpush3.bf16.msk.msra.mxu1 %vm2763_vm11, %v3483_v20  ;;  %vm2816_vm11 = vmpackc.low %vm1513_vm7, %vm1512_vm6  ;;  %vm1522_vm6 = vcmp.eq.s32.totalorder %v3755_v25, %v4244_v52  ;;  %vm1523_vm7 = vcmp.eq.s32.totalorder %v3758_v26, %v4244_v52 }
 0x353   : > { %3220 = vmatprep.subr.bf16.mxu1 %v3484_v41  ;;  %vm2838_vm10 = vmpackc.low %vm1523_vm7, %vm1522_vm6 }
 0x355   : > { %1444 = vmatmul.mubr.bf16.vlgmr.msra.gmra.mxu1 %v3848_v40 }
 0x356   : > { %3222 = vmatprep.mubr.msk.bf16.mxu1 %vm3485_vm0, %v3484_v41 }
 0x3f5   : > { %v4234_v42 = vpop.f32.mrf.mxu1 }
 0x3f6   : > { %v1293_v43 = vmax.f32 %v4138_v55, %v4234_v42 }
 0x3f7   : > { %v3212_v44 = vpop.f32.mrf.mxu1 }
 0x3f9   : > { %v4238_v45 = vpop.f32.mrf.mxu1 }
 0x3fa   : > { %v1294_v46 = vmax.f32 %v4141_v60, %v4238_v45  ;;  %v4375_v45 = vld [vmem:[%s3658_s22 + $0x4] ss:$8 sps:$4 sm:$0xff]  }
 0x3fb   : > { %v3213_v47 = vpop.f32.mrf.mxu1 }
 0x415   : > { %v3104_v49 = vpop.f32.mrf.mxu1 }
 0x417   : > { %v3105_v50 = vpop.f32.mrf.mxu1 }
 0x418   : > { %v3106_v58 = vadd.f32 %v3105_v50, %v3104_v49 }
 0x419   : > { %v3107_v53 = vpop.f32.mrf.mxu1 }
 0x41b   : > { %v3108_v57 = vpop.f32.mrf.mxu1 }
 0x41c   : > { %v3109_v59 = vadd.f32 %v3108_v57, %v3107_v53 }
 0x41e   : > { %v1452_v61 = vpack.c.bf16 %v3109_v59, %v3106_v58 }
 0x420   : > { %3215 = vmatpush3.bf16.msra.mxu0 %v1452_v61 }
 0x421   : > { %3112 = vmatprep.subr.msk.bf16.mxu0 %vm2830_vm14, %v3483_v20  ;;  %vm1511_vm14 = vcmp.eq.s32.totalorder %v3708_v19, %v4244_v52 }
 0x422   : > { %vm2818_vm2 = vmpackc.low %vm1511_vm14, %vm1510_vm13  ;;  %vm1520_vm13 = vcmp.eq.s32.totalorder %v3777_v29, %v4244_v52  ;;  %vm1521_vm14 = vcmp.eq.s32.totalorder %v3780_v30, %v4244_v52 }
 0x423   : > { %3217 = vmatmul.mubr.msk.bf16.vlgmr.msra.gmra.mxu0 %vm647_vm8, %v3870_v51  ;;  %vm2840_vm1 = vmpackc.low %vm1521_vm14, %vm1520_vm13 }
 0x424   : > { %3113 = vmatpush3.bf16.msk.msra.mxu0 %vm2814_vm4, %v3483_v20  ;;  %1644 = vmatprep.mubr.bf16.mxu0 %v3702_v17  ;;  %vm1508_vm4 = vcmp.eq.s32.totalorder %v3745_v23, %v4244_v52 }
 0x425   : > { %3114 = vmatprep.subr.msk.bf16.mxu0 %vm2832_vm5, %v3483_v20  ;;  %vm1509_vm5 = vcmp.eq.s32.totalorder %v3748_v24, %v4244_v52 }
 0x426   : > { %vm2820_vm9 = vmpackc.low %vm1509_vm5, %vm1508_vm4  ;;  %vm1518_vm4 = vcmp.eq.s32.totalorder %v3799_v33, %v4244_v52  ;;  %vm1519_vm5 = vcmp.eq.s32.totalorder %v3802_v34, %v4244_v52 }
 0x427   : > { %vm2842_vm7 = vmpackc.low %vm1519_vm5, %vm1518_vm4  ;;  %vm1732_vm4 = vcmp.eq.s32.totalorder %v3669_v6, %v4348_v14 }
 0x428   : > { %3115 = vmatpush3.bf16.msk.msra.mxu0 %vm2816_vm11, %v3483_v20  ;;  %vm1506_vm11 = vcmp.eq.s32.totalorder %v3767_v27, %v4244_v52 }
 0x429   : > { %3116 = vmatprep.subr.msk.bf16.mxu0 %vm2834_vm12, %v3483_v20  ;;  %vm1507_vm12 = vcmp.eq.s32.totalorder %v3770_v28, %v4244_v52 }
 0x42a   : > { %vm2822_vm15 = vmpackc.low %vm1507_vm12, %vm1506_vm11  ;;  %vm1516_vm11 = vcmp.eq.s32.totalorder %v3821_v37, %v4244_v52  ;;  %vm1517_vm12 = vcmp.eq.s32.totalorder %v3824_v38, %v4244_v52 }
 0x42b   : > { %vm2844_vm14 = vmpackc.low %vm1517_vm12, %vm1516_vm11 }
 0x42c   : > { %3117 = vmatpush3.bf16.msk.msra.mxu0 %vm2818_vm2, %v3483_v20  ;;  %vm1504_vm2 = vcmp.eq.s32.totalorder %v3789_v31, %v4244_v52 }
 0x42d   : > { %3118 = vmatprep.subr.msk.bf16.mxu0 %vm2836_vm3, %v3483_v20  ;;  %vm1505_vm3 = vcmp.eq.s32.totalorder %v3792_v32, %v4244_v52 }
 0x42e   : > { %vm2824_vm6 = vmpackc.low %vm1505_vm3, %vm1504_vm2  ;;  %vm1731_vm3 = vcmp.eq.s32.totalorder %v3666_v5, %v4348_v14 }
 0x42f   : > { %vm2895_vm5 = vmpackc.low %vm1732_vm4, %vm1731_vm3  ;;  %vm1711_vm4 = vcmp.eq.s32.totalorder %v3705_v18, %v4348_v14 }
 0x430   : > { %3119 = vmatpush3.bf16.msk.msra.mxu0 %vm2820_vm9, %v3483_v20  ;;  %vm1502_vm9 = vcmp.eq.s32.totalorder %v3811_v35, %v4244_v52 }
 0x431   : > { %3120 = vmatprep.subr.msk.bf16.mxu0 %vm2838_vm10, %v3483_v20  ;;  %vm1503_vm10 = vcmp.eq.s32.totalorder %v3814_v36, %v4244_v52 }
 0x432   : > { %vm2826_vm13 = vmpackc.low %vm1503_vm10, %vm1502_vm9  ;;  %vm1729_vm9 = vcmp.eq.s32.totalorder %v3681_v10, %v4348_v14  ;;  %vm1730_vm10 = vcmp.eq.s32.totalorder %v3684_v11, %v4348_v14 }
 0x433   : > { %vm2897_vm12 = vmpackc.low %vm1730_vm10, %vm1729_vm9 }
 0x434   : > { %3121 = vmatpush3.bf16.msk.msra.mxu0 %vm2822_vm15, %v3483_v20  ;;  %vm1500_vm15 = vcmp.eq.s32.totalorder %v3651_v3, %v4244_v52 }
 0x435   : > { %3122 = vmatprep.subr.msk.bf16.mxu0 %vm2840_vm1, %v3483_v20  ;;  %vm1501_vm1 = vcmp.eq.s32.totalorder %v3833_v39, %v4244_v52  ;;  %v1900_v52 = vsub.s32 7, %v3651_v3 }
 0x436   : > { %vm2828_vm2 = vmpackc.low %vm1501_vm1, %vm1500_vm15  ;;  %vm1727_vm15 = vcmp.eq.s32.totalorder %v3696_v15, %v4348_v14  ;;  %vm1728_vm1 = vcmp.eq.s32.totalorder %v3699_v16, %v4348_v14 }
 0x437   : > { %vm2899_vm3 = vmpackc.low %vm1728_vm1, %vm1727_vm15 }
 0x438   : > { %3123 = vmatpush3.bf16.msk.msra.mxu0 %vm2824_vm6, %v3483_v20  ;;  %vm1715_vm6 = vcmp.eq.s32.totalorder %v3672_v7, %v4348_v14 }
 0x439   : > { %3124 = vmatprep.subr.msk.bf16.mxu0 %vm2842_vm7, %v3483_v20  ;;  %vm1716_vm7 = vcmp.eq.s32.totalorder %v3675_v8, %v4348_v14 }
 0x43a   : > { %vm2879_vm11 = vmpackc.low %vm1716_vm7, %vm1715_vm6  ;;  %vm1725_vm6 = vcmp.eq.s32.totalorder %v3733_v21, %v4348_v14  ;;  %vm1726_vm7 = vcmp.eq.s32.totalorder %v3736_v22, %v4348_v14 }
 0x43b   : > { %vm2901_vm10 = vmpackc.low %vm1726_vm7, %vm1725_vm6 }
 0x43c   : > { %3125 = vmatpush3.bf16.msk.msra.mxu0 %vm2826_vm13, %v3483_v20  ;;  %vm1713_vm13 = vcmp.eq.s32.totalorder %v3687_v12, %v4348_v14 }
 0x43d   : > { %3126 = vmatprep.subr.msk.bf16.mxu0 %vm2844_vm14, %v3483_v20  ;;  %vm1714_vm14 = vcmp.eq.s32.totalorder %v3690_v13, %v4348_v14 }
 0x440   : > { %3127 = vmatpush3.bf16.msk.msra.mxu0 %vm2828_vm2, %v3483_v20  ;;  %vm2881_vm2 = vmpackc.low %vm1714_vm14, %vm1713_vm13  ;;  %vm1723_vm13 = vcmp.eq.s32.totalorder %v3755_v25, %v4348_v14  ;;  %vm1724_vm14 = vcmp.eq.s32.totalorder %v3758_v26, %v4348_v14 }
 0x441   : > { %3226 = vmatprep.subr.bf16.mxu0 %v3484_v41  ;;  %vm2903_vm1 = vmpackc.low %vm1724_vm14, %vm1723_vm13 }
 0x443   : > { %1645 = vmatmul.mubr.bf16.vlgmr.msra.gmra.mxu0 %v3848_v40 }
 0x444   : > { %3228 = vmatprep.mubr.msk.bf16.mxu0 %vm3485_vm0, %v3484_v41 }
 0x4e3   : > { %v1487_v9 = vpop.f32.mrf.mxu0 }
 0x4e4   : > { %v4336_v17 = vmax.f32 %v1293_v43, %v1487_v9 }
 0x4e5   : > { %v3218_v62 = vpop.f32.mrf.mxu0 }
 0x4e7   : > { %v1490_v63 = vpop.f32.mrf.mxu0 }
 0x4e8   : > { %v4341_v0 = vmax.f32 %v1294_v46, %v1490_v63 }
 0x4e9   : > { %v3219_v1 = vpop.f32.mrf.mxu0 }
 0x503   : > { %v3128_v4 = vpop.f32.mrf.mxu0 }
 0x505   : > { %v3129_v54 = vpop.f32.mrf.mxu0 }
 0x506   : > { %v3130_v60 = vadd.f32 %v3129_v54, %v3128_v4  ;;  %v3351_v4 = vld [vmem:[%s4648_s6 + $0x8] sm:$0xff]  }
 0x507   : > { %v3131_v55 = vpop.f32.mrf.mxu0 }
 0x509   : > { %v3132_v42 = vpop.f32.mrf.mxu0 }
 0x50a   : > { %v3133_v43 = vadd.f32 %v3132_v42, %v3131_v55 }
 0x50c   : > { %v1653_v44 = vpack.c.bf16 %v3133_v43, %v3130_v60 }
 0x50e   : > { %3221 = vmatpush3.bf16.msra.mxu1 %v1653_v44 }
 0x50f   : > { %3136 = vmatprep.subr.msk.bf16.mxu1 %vm2895_vm5, %v3483_v20  ;;  %vm1712_vm5 = vcmp.eq.s32.totalorder %v3708_v19, %v4348_v14 }
 0x510   : > { %vm2883_vm9 = vmpackc.low %vm1712_vm5, %vm1711_vm4  ;;  %vm1721_vm4 = vcmp.eq.s32.totalorder %v3777_v29, %v4348_v14  ;;  %vm1722_vm5 = vcmp.eq.s32.totalorder %v3780_v30, %v4348_v14 }
 0x511   : > { %3223 = vmatmul.mubr.msk.bf16.vlgmr.msra.gmra.mxu1 %vm647_vm8, %v3870_v51  ;;  %vm2905_vm7 = vmpackc.low %vm1722_vm5, %vm1721_vm4 }
 0x512   : > { %3137 = vmatpush3.bf16.msk.msra.mxu1 %vm2879_vm11, %v3483_v20  ;;  %1845 = vmatprep.mubr.bf16.mxu1 %v4375_v45  ;;  %vm1709_vm11 = vcmp.eq.s32.totalorder %v3745_v23, %v4348_v14 }
 0x513   : > { %3138 = vmatprep.subr.msk.bf16.mxu1 %vm2897_vm12, %v3483_v20  ;;  %vm1710_vm12 = vcmp.eq.s32.totalorder %v3748_v24, %v4348_v14 }
 0x514   : > { %vm2885_vm15 = vmpackc.low %vm1710_vm12, %vm1709_vm11  ;;  %vm1719_vm11 = vcmp.eq.s32.totalorder %v3799_v33, %v4348_v14  ;;  %vm1720_vm12 = vcmp.eq.s32.totalorder %v3802_v34, %v4348_v14 }
 0x515   : > { %vm2907_vm14 = vmpackc.low %vm1720_vm12, %vm1719_vm11 }
 0x516   : > { %3139 = vmatpush3.bf16.msk.msra.mxu1 %vm2881_vm2, %v3483_v20  ;;  %vm1707_vm2 = vcmp.eq.s32.totalorder %v3767_v27, %v4348_v14 }
 0x517   : > { %3140 = vmatprep.subr.msk.bf16.mxu1 %vm2899_vm3, %v3483_v20  ;;  %vm1708_vm3 = vcmp.eq.s32.totalorder %v3770_v28, %v4348_v14 }
 0x518   : > { %vm2887_vm6 = vmpackc.low %vm1708_vm3, %vm1707_vm2  ;;  %vm1717_vm2 = vcmp.eq.s32.totalorder %v3821_v37, %v4348_v14  ;;  %vm1718_vm3 = vcmp.eq.s32.totalorder %v3824_v38, %v4348_v14 }
 0x519   : > { %vm2909_vm5 = vmpackc.low %vm1718_vm3, %vm1717_vm2 }
 0x51a   : > { %3141 = vmatpush3.bf16.msk.msra.mxu1 %vm2883_vm9, %v3483_v20  ;;  %vm1705_vm9 = vcmp.eq.s32.totalorder %v3789_v31, %v4348_v14 }
 0x51b   : > { %3142 = vmatprep.subr.msk.bf16.mxu1 %vm2901_vm10, %v3483_v20  ;;  %vm1706_vm10 = vcmp.eq.s32.totalorder %v3792_v32, %v4348_v14 }
 0x51c   : > { %vm2889_vm13 = vmpackc.low %vm1706_vm10, %vm1705_vm9 }
 0x51e   : > { %3143 = vmatpush3.bf16.msk.msra.mxu1 %vm2885_vm15, %v3483_v20  ;;  %vm1703_vm15 = vcmp.eq.s32.totalorder %v3811_v35, %v4348_v14 }
 0x51f   : > { %3144 = vmatprep.subr.msk.bf16.mxu1 %vm2903_vm1, %v3483_v20  ;;  %vm1704_vm1 = vcmp.eq.s32.totalorder %v3814_v36, %v4348_v14 }
 0x520   : > { %vm2891_vm4 = vmpackc.low %vm1704_vm1, %vm1703_vm15 }
 0x522   : > { %3145 = vmatpush3.bf16.msk.msra.mxu1 %vm2887_vm6, %v3483_v20  ;;  %vm1701_vm6 = vcmp.eq.s32.totalorder %v3651_v3, %v4348_v14 }
 0x523   : > { %3146 = vmatprep.subr.msk.bf16.mxu1 %vm2905_vm7, %v3483_v20  ;;  %vm1702_vm7 = vcmp.eq.s32.totalorder %v3833_v39, %v4348_v14 }
 0x524   : > { %vm2893_vm9 = vmpackc.low %vm1702_vm7, %vm1701_vm6 }
 0x526   : > { %3147 = vmatpush3.bf16.msk.msra.mxu1 %vm2889_vm13, %v3483_v20 }
 0x527   : > { %3148 = vmatprep.subr.msk.bf16.mxu1 %vm2907_vm14, %v3483_v20 }
 0x52a   : > { %3149 = vmatpush3.bf16.msk.msra.mxu1 %vm2891_vm4, %v3483_v20 }
 0x52b   : > { %3150 = vmatprep.subr.msk.bf16.mxu1 %vm2909_vm5, %v3483_v20 }
 0x52e   : > { %3151 = vmatpush3.bf16.msk.msra.mxu1 %vm2893_vm9, %v3483_v20 }
 0x52f   : > { %3232 = vmatprep.subr.bf16.mxu1 %v3484_v41 }
 0x531   : > { %1846 = vmatmul.mubr.bf16.vlgmr.msra.gmra.mxu1 %v3848_v40  ;;  %v4450_v40 = vrot.slane %v4345_v56, %v1900_v52 }
 0x532   : > { %3234 = vmatprep.mubr.msk.bf16.mxu1 %vm3485_vm0, %v3484_v41 }
 0x533   : > { %vm1932_vm0 = vcmp.eq.s32.totalorder %v3666_v5, %v4450_v40  ;;  %vm1933_vm10 = vcmp.eq.s32.totalorder %v3669_v6, %v4450_v40  ;;  %vm1916_vm12 = vcmp.eq.s32.totalorder %v3672_v7, %v4450_v40  ;;  %vm1917_vm13 = vcmp.eq.s32.totalorder %v3675_v8, %v4450_v40  ;;  %v4469_v5 = vld [vmem:[#allocation3] sm:$0xff]   ;;  %v3355_v6 = vld [vmem:[%s3658_s22] ss:$8 sps:$4 sm:$0xff]   ;;  %s4671_s22 = sld [smem:[#allocation12_spill]] }
 0x534   : > { %vm2960_vm11 = vmpackc.low %vm1933_vm10, %vm1932_vm0  ;;  %vm1930_vm14 = vcmp.eq.s32.totalorder %v3681_v10, %v4450_v40  ;;  %vm1931_vm15 = vcmp.eq.s32.totalorder %v3684_v11, %v4450_v40  ;;  %vm1914_vm3 = vcmp.eq.s32.totalorder %v3687_v12, %v4450_v40  ;;  %vm1915_vm4 = vcmp.eq.s32.totalorder %v3690_v13, %v4450_v40  ;;  %v2099_v7 = vld [vmem:[%s4646_s4] sm:$0xff]  ;;  %v2264_v10 = vld [vmem:[%s4649_s7 + $0x10] sm:$0xff] }
 0x535   : > { %vm2944_vm1 = vmpackc.low %vm1917_vm13, %vm1916_vm12  ;;  %vm1928_vm5 = vcmp.eq.s32.totalorder %v3696_v15, %v4450_v40  ;;  %vm1929_vm6 = vcmp.eq.s32.totalorder %v3699_v16, %v4450_v40  ;;  %vm1912_vm0 = vcmp.eq.s32.totalorder %v3705_v18, %v4450_v40  ;;  %vm1913_vm10 = vcmp.eq.s32.totalorder %v3708_v19, %v4450_v40 }
 0x536   : > { %vm2962_vm2 = vmpackc.low %vm1931_vm15, %vm1930_vm14  ;;  %vm1927_vm12 = vcmp.eq.s32.totalorder %v3736_v22, %v4450_v40  ;;  %vm1910_vm15 = vcmp.eq.s32.totalorder %v3745_v23, %v4450_v40  ;;  %v3486_v8 = vmov 0  }
 0x537   : > { %vm2946_vm7 = vmpackc.low %vm1915_vm4, %vm1914_vm3  ;;  %vm1925_vm3 = vcmp.eq.s32.totalorder %v3758_v26, %v4450_v40  ;;  %3341 = vset.pattern.permute.xlu0 %v3486_v8  ;;  %3342 = vset.pattern.permute.xlu1 %v3486_v8  ;;  %v3347_v26 = vld [vmem:[%s3642_s13] sm:$0xff]   ;;  %s4672_s13 = sld [smem:[#allocation15_spill]] }
 0x538   : > { %vm2964_vm9 = vmpackc.low %vm1929_vm6, %vm1928_vm5  ;;  %vm1908_vm6 = vcmp.eq.s32.totalorder %v3767_v27, %v4450_v40  ;;  %2103 = vperm.xlu0 %3341, %v2099_v7   ;;  %v3348_v27 = vld [vmem:[%s4647_s5] sm:$0xff]  }
 0x539   : > { %vm2948_vm13 = vmpackc.low %vm1913_vm10, %vm1912_vm0  ;;  %vm1923_vm0 = vcmp.eq.s32.totalorder %v3780_v30, %v4450_v40  ;;  %v2262_v30 = vld [vmem:[%s4649_s7] sm:$0xff]  ;;  %p4673_p13 = scmp.ne.s32.totalorder %s4671_s22, 0 }
 0x53a   : > { %2268 = vperm.xlu1 %3342, %v2262_v30  }
 0x53b   : > { %p3384_p0 = pnand %p3383_p9, %p4673_p13 }
 0x53d   : > { %s4589_s14 = scalar_lea.hbm %s4672_s13, %s2988_s9  ;;  %p3385_p1 = pneg %p3384_p0 }
 0x53f   : > { %p3392_p6 = pnand %p3391_p5, %p3385_p1 }
 0x5b5   : > { %v2269_v54 = vpop.permute.xlu1 %2268 }
 0x5d1   : > { %v4440_v51 = vpop.f32.mrf.mxu1 }
 0x5d2   : > { %v1695_v46 = vmax.f32 %v4336_v17, %v4440_v51 }
 0x5d3   : > { %v3224_v47 = vpop.f32.mrf.mxu1 }
 0x5d5   : > { %v4444_v48 = vpop.f32.mrf.mxu1 }
 0x5d6   : > { %v1696_v49 = vmax.f32 %v4341_v0, %v4444_v48 }
 0x5d7   : > { %v3225_v50 = vpop.f32.mrf.mxu1 }
 0x5f1   : > { %v3152_v53 = vpop.f32.mrf.mxu1 }
 0x5f3   : > { %v3153_v57 = vpop.f32.mrf.mxu1 }
 0x5f4   : > { %v3154_v59 = vadd.f32 %v3153_v57, %v3152_v53 }
 0x5f5   : > { %v3155_v41 = vpop.f32.mrf.mxu1 }
 0x5f7   : > { %v3156_v58 = vpop.f32.mrf.mxu1 }
 0x5f8   : > { %v3157_v61 = vadd.f32 %v3156_v58, %v3155_v41 }
 0x5fa   : > { %v1854_v9 = vpack.c.bf16 %v3157_v61, %v3154_v59 }
 0x5fc   : > { %3227 = vmatpush3.bf16.msra.mxu0 %v1854_v9 }
 0x5fd   : > { %3160 = vmatprep.subr.msk.bf16.mxu0 %vm2960_vm11, %v3483_v20  ;;  %vm1926_vm11 = vcmp.eq.s32.totalorder %v3733_v21, %v4450_v40 }
 0x5fe   : > { %vm2966_vm14 = vmpackc.low %vm1927_vm12, %vm1926_vm11  ;;  %vm1906_vm12 = vcmp.eq.s32.totalorder %v3789_v31, %v4450_v40  ;;  %v2263_v31 = vld [vmem:[%s4649_s7 + $0x8] sm:$0xff] }
 0x5ff   : > { %3229 = vmatmul.mubr.msk.bf16.vlgmr.msra.gmra.mxu0 %vm647_vm8, %v4469_v5  ;;  %2273 = vperm.xlu1 %3342, %v2263_v31  }
 0x600   : > { %3161 = vmatpush3.bf16.msk.msra.mxu0 %vm2944_vm1, %v3483_v20  ;;  %2046 = vmatprep.mubr.bf16.mxu0 %v4375_v45  ;;  %vm1911_vm1 = vcmp.eq.s32.totalorder %v3748_v24, %v4450_v40 }
 0x601   : > { %3162 = vmatprep.subr.msk.bf16.mxu0 %vm2962_vm2, %v3483_v20  ;;  %vm1924_vm2 = vcmp.eq.s32.totalorder %v3755_v25, %v4450_v40  ;;  %vm2950_vm4 = vmpackc.low %vm1911_vm1, %vm1910_vm15  ;;  %vm1921_vm15 = vcmp.eq.s32.totalorder %v3802_v34, %v4450_v40 }
 0x602   : > { %vm2968_vm5 = vmpackc.low %vm1925_vm3, %vm1924_vm2  ;;  %vm1904_vm3 = vcmp.eq.s32.totalorder %v3811_v35, %v4450_v40 }
 0x604   : > { %3163 = vmatpush3.bf16.msk.msra.mxu0 %vm2946_vm7, %v3483_v20  ;;  %vm1909_vm7 = vcmp.eq.s32.totalorder %v3770_v28, %v4450_v40  ;;  %v3350_v28 = vld [vmem:[%s4647_s5 + $0x8] sm:$0xff]  }
 0x605   : > { %3164 = vmatprep.subr.msk.bf16.mxu0 %vm2964_vm9, %v3483_v20  ;;  %vm1922_vm9 = vcmp.eq.s32.totalorder %v3777_v29, %v4450_v40  ;;  %vm2952_vm10 = vmpackc.low %vm1909_vm7, %vm1908_vm6  ;;  %vm1919_vm6 = vcmp.eq.s32.totalorder %v3824_v38, %v4450_v40  ;;  %v3349_v29 = vld [vmem:[%s4648_s6] sm:$0xff]  }
 0x606   : > { %vm2970_vm11 = vmpackc.low %vm1923_vm0, %vm1922_vm9  ;;  %vm1902_vm0 = vcmp.eq.s32.totalorder %v3651_v3, %v4450_v40  ;;  %v2100_v3 = vld [vmem:[%s4646_s4 + $0x8] sm:$0xff] }
 0x607   : > { %2108 = vperm.xlu0 %3341, %v2100_v3  }
 0x608   : > { %3165 = vmatpush3.bf16.msk.msra.mxu0 %vm2948_vm13, %v3483_v20  ;;  %vm1907_vm13 = vcmp.eq.s32.totalorder %v3792_v32, %v4450_v40  ;;  %v2265_v32 = vld [vmem:[%s4649_s7 + $0x18] sm:$0xff] }
 0x609   : > { %3166 = vmatprep.subr.msk.bf16.mxu0 %vm2966_vm14, %v3483_v20  ;;  %vm1920_vm14 = vcmp.eq.s32.totalorder %v3799_v33, %v4450_v40  ;;  %vm2954_vm1 = vmpackc.low %vm1907_vm13, %vm1906_vm12  ;;  %2283 = vperm.xlu1 %3342, %v2265_v32   ;;  %v2104_v33 = vpop.permute.xlu0 %2103 }
 0x60a   : > { %vm2972_vm2 = vmpackc.low %vm1921_vm15, %vm1920_vm14 }
 0x60b   : > { %2278 = vperm.xlu0 %3341, %v2264_v10  }
 0x60c   : > { %3167 = vmatpush3.bf16.msk.msra.mxu0 %vm2950_vm4, %v3483_v20  ;;  %vm1905_vm4 = vcmp.eq.s32.totalorder %v3814_v36, %v4450_v40 }
 0x60d   : > { %3168 = vmatprep.subr.msk.bf16.mxu0 %vm2968_vm5, %v3483_v20  ;;  %vm1918_vm5 = vcmp.eq.s32.totalorder %v3821_v37, %v4450_v40  ;;  %vm2956_vm7 = vmpackc.low %vm1905_vm4, %vm1904_vm3 }
 0x60e   : > { %vm2974_vm9 = vmpackc.low %vm1919_vm6, %vm1918_vm5 }
 0x610   : > { %3169 = vmatpush3.bf16.msk.msra.mxu0 %vm2952_vm10, %v3483_v20  ;;  %vm1903_vm10 = vcmp.eq.s32.totalorder %v3833_v39, %v4450_v40 }
 0x611   : > { %3170 = vmatprep.subr.msk.bf16.mxu0 %vm2970_vm11, %v3483_v20  ;;  %vm2958_vm11 = vmpackc.low %vm1903_vm10, %vm1902_vm0 }
 0x614   : > { %3171 = vmatpush3.bf16.msk.msra.mxu0 %vm2954_vm1, %v3483_v20 }
 0x615   : > { %3172 = vmatprep.subr.msk.bf16.mxu0 %vm2972_vm2, %v3483_v20 }
 0x618   : > { %3173 = vmatpush3.bf16.msk.msra.mxu0 %vm2956_vm7, %v3483_v20 }
 0x619   : > { %3174 = vmatprep.subr.msk.bf16.mxu0 %vm2974_vm9, %v3483_v20 }
 0x61c   : > { %3175 = vmatpush3.bf16.msk.msra.mxu0 %vm2958_vm11, %v3483_v20 }
 0x61d   : > { %3244 = vmatprep.subr.bf16.mxu0 %v3347_v26 }
 0x61f   : > { %2047 = vmatmul.mubr.bf16.vlgmr.msra.gmra.mxu0 %v3355_v6 }
 0x620   : > { %3245 = vmatpush3.bf16.msra.mxu0 %v3347_v26  ;;  %3246 = vmatprep.mubr.msk.bf16.mxu0 %vm647_vm8, %v3348_v27 }
 0x627   : > { %3247 = vmatmul.mubr.msk.bf16.vlgmr.msra.gmra.mxu0 %vm647_vm8, %v3350_v28 }
 0x67a   : > { %v2274_v55 = vpop.permute.xlu1 %2273 }
 0x682   : > { %v2109_v17 = vpop.permute.xlu0 %2108 }
 0x684   : > { %v2284_v52 = vpop.permute.xlu1 %2283 }
 0x686   : > { %v2279_v60 = vpop.permute.xlu0 %2278 }
 0x6bf   : > { %v1889_v11 = vpop.f32.mrf.mxu0 }
 0x6c0   : > { %v1896_v12 = vmax.f32 %v1695_v46, %v1889_v11 }
 0x6c1   : > { %v3230_v13 = vpop.f32.mrf.mxu0 }
 0x6c3   : > { %v1892_v15 = vpop.f32.mrf.mxu0 }
 0x6c4   : > { %v1897_v16 = vmax.f32 %v1696_v49, %v1892_v15 }
 0x6c5   : > { %v3231_v18 = vpop.f32.mrf.mxu0 }
 0x6df   : > { %v3176_v19 = vpop.f32.mrf.mxu0 }
 0x6e1   : > { %v3177_v20 = vpop.f32.mrf.mxu0 }
 0x6e2   : > { %v3178_v23 = vadd.f32 %v3177_v20, %v3176_v19 }
 0x6e3   : > { %v3179_v21 = vpop.f32.mrf.mxu0 }
 0x6e5   : > { %v3180_v22 = vpop.f32.mrf.mxu0 }
 0x6e6   : > { %v3181_v24 = vadd.f32 %v3180_v22, %v3179_v21 }
 0x6e7   : > { %v3248_v56 = vpop.f32.mrf.mxu0 }
 0x6e8   : > { %v2055_v25 = vpack.c.bf16 %v3181_v24, %v3178_v23 }
 0x6e9   : > { %v2247_v14 = vpop.f32.mrf.mxu0 }
 0x6ea   : > { %3233 = vmatpush3.bf16.msra.mxu1 %v2055_v25 }
 0x6eb   : > { %v3249_v45 = vpop.f32.mrf.mxu0 }
 0x6ed   : > { %3235 = vmatmul.mubr.msk.bf16.vlgmr.msra.gmra.mxu1 %vm647_vm8, %v4469_v5  ;;  %v2250_v53 = vpop.f32.mrf.mxu0 }
 0x6ee   : > { %3240 = vmatprep.mubr.msk.bf16.mxu1 %vm647_vm8, %v3349_v29 }
 0x7ad   : > { %v2090_v34 = vpop.f32.mrf.mxu1 }
 0x7ae   : > { %v2097_v35 = vmax.f32 %v1896_v12, %v2090_v34 }
 0x7af   : > { %v3236_v36 = vpop.f32.mrf.mxu1 }
 0x7b0   : > { %v2111_v38 = vadd.f32 %v2104_v33, %v2097_v35 }
 0x7b1   : > { %v2093_v37 = vpop.f32.mrf.mxu1 }
 0x7b2   : > { %v2098_v39 = vmax.f32 %v1897_v16, %v2093_v37  ;;  %v2113_v0 = vmax.f32 %v2111_v38, 0.0 }
 0x7b3   : > { %v3237_v62 = vpop.f32.mrf.mxu1 }
 0x7b4   : > { %v2112_v63 = vadd.f32 %v2109_v17, %v2098_v39 }
 0x7b6   : > { %v2114_v1 = vmax.f32 %v2112_v63, 0.0 }
 0x7b8   : > { %v2125_v2 = vpack.c.bf16 %v2114_v1, %v2113_v0 }
 0x7ba   : > { %3238 = vmatprep.subr.bf16.mxu1 %v2125_v2 }
 0x7bb   : > { %3239 = vmatpush3.bf16.msra.mxu1 %v2125_v2 }
 0x7be   : > { %3241 = vmatmul.mubr.msk.bf16.vlgmr.msra.gmra.mxu1 %vm647_vm8, %v3351_v4 }
 0x87e   : > { %v3242_v42 = vpop.f32.mrf.mxu1 }
 0x87f   : > { %v2256_v43 = vadd.f32 %v3248_v56, %v3242_v42 }
 0x880   : > { %v2176_v44 = vpop.f32.mrf.mxu1 }
 0x881   : > { %v2288_v51 = vadd.f32 %v2279_v60, %v2256_v43  ;;  %v2248_v46 = vadd.f32 %v2247_v14, %v2176_v44 }
 0x882   : > { %v3243_v47 = vpop.f32.mrf.mxu1 }
 0x883   : > { %v2292_v48 = vmax.f32 %v2288_v51, 0.0  ;;  %v2286_v49 = vadd.f32 %v2269_v54, %v2248_v46  ;;  %v2259_v50 = vadd.f32 %v3249_v45, %v3243_v47 }
 0x884   : > { %v2179_v57 = vpop.f32.mrf.mxu1 }
 0x885   : > { %2296 = vst [vmem:[%s421_s17 + $0x10] sm:$0xff] %v2292_v48  ;;  %v2290_v40 = vmax.f32 %v2286_v49, 0.0  ;;  %v2289_v41 = vadd.f32 %v2284_v52, %v2259_v50  ;;  %v2251_v58 = vadd.f32 %v2250_v53, %v2179_v57 }
 0x887   : > { %2294 = vst [vmem:[%s421_s17] sm:$0xff] %v2290_v40  ;;  %v2293_v59 = vmax.f32 %v2289_v41, 0.0  ;;  %v2287_v61 = vadd.f32 %v2274_v55, %v2251_v58 }
 0x889   : > { %2297 = vst [vmem:[%s421_s17 + $0x18] sm:$0xff] %v2293_v59  ;;  %v2291_v9 = vmax.f32 %v2287_v61, 0.0 }
 0x88b   : > { %2295 = vst [vmem:[%s421_s17 + $0x8] sm:$0xff] %v2291_v9 }
 0x88c   : > { %3395 = shalt.err (!%p3392_p6)
}
 0x88d   : > { %s3396_s15 = scalar_lea.hbm %s4589_s14, 512  ;;  %s3400_s24 = scalar_lea.hbm %s4672_s13, 2048 }
 0x88e   : > { %p3397_p7 = scmp.ne.s32.totalorder %s4589_s14, %s3396_s15  ;;  %p3401_p12 = scmp.lt.s32.totalorder %s4589_s14, %s4672_s13 }
 0x88f   : > { %p3402_p3 = scmp.lt.s32.totalorder %s3400_s24, %s3396_s15 }
 0x890   : > { %p3398_p10 = pnand %p3397_p7, %p4673_p13 }
 0x891   : > { %p3403_p8 = por %p3402_p3, %p3401_p12 }
 0x892   : > { %p3399_p11 = pneg %p3398_p10 }
 0x894   : > { %p3404_p9 = pnand %p3403_p8, %p3399_p11 }
 0x896   : > { %3407 = shalt.err (!%p3404_p9)
}
 0x897   : > { %s3488_s30 = smov 128   ;;  %s3489_s23 = smov 256  }
 0x898   : > { %s3490_s16 = smov 8  }
 0x899   : > { %3254 = dma.vmem_to_hbm [thread:$0]  (%p4673_p13), %s4584_s25, 512, %s4589_s14, %s2299_s18, %s3488_s30, %s3489_s23, %s3490_s16  }
 0x89a PF: > { %s4674_s26 = sld [smem:[#allocation9_spill]]  ;;  %p3266_p0 = scmp.ge.s32.totalorder %s3478_s12, 2 }
 0x89b   : > { %s4675_s8 = sld [smem:[#allocation13_spill]] }
 0x8a0   : > { %s2328_s27 = sand.u32 1, %s4674_s26  }
 0x8a1   : > { %p4676_p1 = scmp.ne.s32.totalorder %s4675_s8, 0  ;;  %s2329_s15 = scalar_lea.sflag [#allocation5], %s2328_s27 }
 0x8a3   : > { %p3261_p2 = pnand %p3266_p0, %p4676_p1 }
 0x8a5   : > { %p3262_p4 = pneg %p3261_p2 }
 0x8a7   : > { %3445 = dma.done.wait (%p3262_p4), %s2329_s15, 512  }
 0x8a8   : > { %3447 = vsyncadd (%p3262_p4), %s2329_s15, 4294966784  ;;  %s22_s12 = sadd.s32 1, %s3478_s12   ;;  %s4677_s22 = sld [smem:[#allocation14_spill]] }
 0x8a9   : > { %p19_p5 = scmp.ge.s32.totalorder %s22_s12, 6   ;;  %s4678_s19 = sld [smem:[#allocation10_spill]] }
 0x8aa   : > { %s4679_s25 = sld [smem:[#allocation11_spill]]  ;;  %s4680_s27 = smov %s3454_s28 }
 0x8ab   : > { %s4681_s28 = smov %s3458_s29  ;;  %s4683_s30 = smov %s3470_s10 }
 0x8ac   : > { %s4684_s9 = smov %s3474_s11  ;;  %21 = sbr.rel (!%p19_p5) target bundleno = 8 (0x8), region = 144 }
 0x8ae   : > { %s4682_s29 = smov %s4677_s22 }
 0x8af   : > { %s4685_s10 = smov %s4678_s19 }
 0x8b0   : > { %s4686_s11 = smov %s4679_s25 }
 0x8b1   :  { %2334 = vsyncpa [#allocation4], 1 }
 0x8b2   :  { %2336 = vsyncpa [#allocation4 + $0x1], 1 }
 0x8b3   :  { %2337 = vsyncpa [#allocation5], 1 }
 0x8b4   :  { %2339 = vsyncpa [#allocation5 + $0x1], 1 }

</bundles_post_ra>
